<compile_context>
chip_gen: v7x
topology: tpu7x:2x2x1
jax: 0.10.0
libtpu: 0.0.40
codegen_flags: <defaults>
</compile_context>

<pallas_src>
import functools

import jax
import jax.numpy as jnp
import numpy as np
from jax.experimental import pallas as pl
from jax.experimental.pallas import tpu as pltpu


def _round_up(n, m):
    return ((n + m - 1) // m) * m


def encoder_kernel(x_ref, c_ref, t1_ref, t2_ref, wx_ref, wc_ref, whead_ref,
                   b_ref, out_ref):
    c1l = t1_ref.shape[1]      # 32 * L
    c2l = t2_ref.shape[1]      # 64 * L
    hid = wx_ref.shape[1]      # 256
    nh = whead_ref.shape[1]    # 128  (2*latent, lane-padded)

    # conv1 (1->32, k=5, pad=2) + ReLU : one (TB, L) x (L, 32L) bf16 matmul.
    h1 = jnp.maximum(
        jnp.dot(x_ref[...], t1_ref[...], preferred_element_type=jnp.float32)
        + b_ref[0:1, 0:c1l], 0.0)

    # conv2 (32->64, k=5, pad=2) + ReLU : one (TB, 32L) x (32L, 64L) matmul.
    h2 = jnp.maximum(
        jnp.dot(h1.astype(jnp.bfloat16), t2_ref[...],
                preferred_element_type=jnp.float32)
        + b_ref[1:2, 0:c2l], 0.0)

    # fc1 on [flatten(h2), c] + ReLU : two clean dots instead of a ragged-K
    # concat.  The torch channel-major flatten is pre-folded into wx; the
    # condition weights live in wc (lane-padded to 128 rows).
    i1 = jnp.maximum(
        jnp.dot(h2.astype(jnp.bfloat16), wx_ref[...],
                preferred_element_type=jnp.float32)
        + jnp.dot(c_ref[...], wc_ref[...], preferred_element_type=jnp.float32)
        + b_ref[2:3, 0:hid], 0.0)

    # fused fc_mu / fc_var heads : one (TB, 256) x (256, 128) matmul,
    # one lane-dense (TB, 128) store.
    out_ref[...] = (
        jnp.dot(i1.astype(jnp.bfloat16), whead_ref[...],
                preferred_element_type=jnp.float32)
        + b_ref[3:4, 0:nh])


def _conv1d_as_dense(w, length):
    """Dense block-Toeplitz matrix for a stride-1 'same' Conv1d.

    w: (Cout, Cin, K) torch-layout Conv1d weight, padding = (K-1)//2.
    Returns T of shape (length*Cin, length*Cout) such that
        out[b, l*Cout + co] = sum_m inp[b, m] * T[m, l*Cout + co],
    where inp[b, j*Cin + ci] is the channels-last flattening of the input.
    """
    cout, cin, k = w.shape
    pad = (k - 1) // 2
    t = np.zeros((length * cin, length * cout), np.float32)
    for l in range(length):
        for tap in range(k):
            j = l + tap - pad
            if 0 <= j < length:
                t[j * cin:(j + 1) * cin, l * cout:(l + 1) * cout] = w[:, :, tap].T
    return t


def prepare_params(params, input_size, condition_size, latent_size):
    """One-time weight preprocessing.  Call ONCE; reuse the returned dict."""
    L, C = input_size, condition_size
    C1, C2, H = 32, 64, 256
    NH = 128 * ((2 * latent_size + 127) // 128)       # lane-padded head width
    CP = 128 * ((C + 127) // 128)                     # lane-padded condition
    W = max(C1 * L, C2 * L, H, NH)                    # packed-bias row width

    w1 = np.asarray(params["conv1_w"], np.float32)    # (32, 1, 5)
    w2 = np.asarray(params["conv2_w"], np.float32)    # (64, 32, 5)
    fw = np.asarray(params["fc1_w"], np.float32)      # (256, 64L + C)
    assert fw.shape == (H, C2 * L + C)

    t1 = _conv1d_as_dense(w1, L)                      # (L,   32L)
    t2 = _conv1d_as_dense(w2, L)                      # (32L, 64L)

    # fc1 x-part: compensate torch's channel-major flatten (col index co*L+l)
    # to match the kernel's channels-last layout (row index l*64+co).
    wx = fw[:, :C2 * L].reshape(H, C2, L).transpose(2, 1, 0).reshape(C2 * L, H)
    # fc1 c-part, lane-padded to 128 rows (matches host-padded c).
    wc = np.zeros((CP, H), np.float32)
    wc[:C, :] = fw[:, C2 * L:].T

    # fused, lane-padded mu/logvar heads.
    whead = np.zeros((H, NH), np.float32)
    whead[:, :latent_size] = np.asarray(params["fc_mu_w"], np.float32).T
    whead[:, latent_size:2 * latent_size] = np.asarray(
        params["fc_var_w"], np.float32).T

    # all biases packed into one array (rows: conv1, conv2, fc1, heads).
    bias = np.zeros((4, W), np.float32)
    bias[0, :C1 * L] = np.tile(np.asarray(params["conv1_b"], np.float32), L)
    bias[1, :C2 * L] = np.tile(np.asarray(params["conv2_b"], np.float32), L)
    bias[2, :H] = np.asarray(params["fc1_b"], np.float32)
    bias[3, :latent_size] = np.asarray(params["fc_mu_b"], np.float32)
    bias[3, latent_size:2 * latent_size] = np.asarray(
        params["fc_var_b"], np.float32)

    return {
        "t1": jnp.asarray(t1, jnp.bfloat16),
        "t2": jnp.asarray(t2, jnp.bfloat16),
        "wx": jnp.asarray(wx, jnp.bfloat16),
        "wc": jnp.asarray(wc, jnp.bfloat16),
        "whead": jnp.asarray(whead, jnp.bfloat16),
        "bias": jnp.asarray(bias, jnp.float32),
    }


@functools.partial(jax.jit, static_argnames=("latent_size",))
def encoder_forward(x, c, packed, *, latent_size):
    """Jitted forward.  `packed` comes from prepare_params (built once)."""
    B, L = x.shape
    C = c.shape[1]
    CP = packed["wc"].shape[0]
    NH = packed["whead"].shape[1]

    # Batch tile: sublane-aligned, capped so per-step intermediates fit the
    # default scoped-VMEM window on all of v5e/v6e/v7x.
    TB = min(512, _round_up(max(B, 8), 8))
    Bp = _round_up(max(B, TB), TB)

    xb = jnp.pad(x.astype(jnp.bfloat16), ((0, Bp - B), (0, 0)))
    cb = jnp.pad(c.astype(jnp.bfloat16), ((0, Bp - B), (0, CP - C)))

    t1, t2 = packed["t1"], packed["t2"]
    wx, wc = packed["wx"], packed["wc"]
    whead, bias = packed["whead"], packed["bias"]

    out = pl.pallas_call(
        encoder_kernel,
        out_shape=jax.ShapeDtypeStruct((Bp, NH), jnp.float32),
        grid=(Bp // TB,),
        in_specs=[
            pl.BlockSpec((TB, L), lambda i: (i, 0)),          # x : batch-tiled
            pl.BlockSpec((TB, CP), lambda i: (i, 0)),         # c : batch-tiled
            pl.BlockSpec(t1.shape, lambda i: (0, 0)),         # weights stay
            pl.BlockSpec(t2.shape, lambda i: (0, 0)),         # VMEM-resident
            pl.BlockSpec(wx.shape, lambda i: (0, 0)),         # across grid
            pl.BlockSpec(wc.shape, lambda i: (0, 0)),         # steps (constant
            pl.BlockSpec(whead.shape, lambda i: (0, 0)),      # block index ->
            pl.BlockSpec(bias.shape, lambda i: (0, 0)),       # no re-DMA)
        ],
        out_specs=pl.BlockSpec((TB, NH), lambda i: (i, 0)),
        compiler_params=pltpu.CompilerParams(
            dimension_semantics=("parallel",)),
    )(xb, cb, t1, t2, wx, wc, whead, bias)

    mu = out[:B, :latent_size]
    logvar = out[:B, latent_size:2 * latent_size]
    return mu, logvar


def torch_reference(x, c, params):
    """Pure-JAX re-statement of the PyTorch forward (NCW layout)."""
    def conv1d(h, w, b):
        out = jax.lax.conv_general_dilated(
            h, w, window_strides=(1,), padding=[(2, 2)],
            dimension_numbers=("NCW", "OIW", "NCW"))
        return out + b[None, :, None]

    h = jax.nn.relu(conv1d(x[:, None, :], params["conv1_w"], params["conv1_b"]))
    h = jax.nn.relu(conv1d(h, params["conv2_w"], params["conv2_b"]))
    flat = h.reshape(h.shape[0], -1)                 # torch .view: channel-major
    xc = jnp.concatenate([flat, c], axis=1)
    i1 = jax.nn.relu(xc @ params["fc1_w"].T + params["fc1_b"])
    mu = i1 @ params["fc_mu_w"].T + params["fc_mu_b"]
    logvar = i1 @ params["fc_var_w"].T + params["fc_var_b"]
    return mu, logvar


if __name__ == "__main__":
    input_size, condition_size, latent_size = 16, 8, 8
    batch = 2
    fc1_in = input_size * 128 // 2 + condition_size   # as in the module: 1032

    key = jax.random.PRNGKey(0)
    keys = jax.random.split(key, 12)
    s = 0.05
    params = {
        "conv1_w": s * jax.random.normal(keys[0], (32, 1, 5), jnp.float32),
        "conv1_b": s * jax.random.normal(keys[1], (32,), jnp.float32),
        "conv2_w": s * jax.random.normal(keys[2], (64, 32, 5), jnp.float32),
        "conv2_b": s * jax.random.normal(keys[3], (64,), jnp.float32),
        "fc1_w": s * jax.random.normal(keys[4], (256, fc1_in), jnp.float32),
        "fc1_b": s * jax.random.normal(keys[5], (256,), jnp.float32),
        "fc_mu_w": s * jax.random.normal(keys[6], (latent_size, 256), jnp.float32),
        "fc_mu_b": s * jax.random.normal(keys[7], (latent_size,), jnp.float32),
        "fc_var_w": s * jax.random.normal(keys[8], (latent_size, 256), jnp.float32),
        "fc_var_b": s * jax.random.normal(keys[9], (latent_size,), jnp.float32),
    }
    x = jax.random.normal(keys[10], (batch, input_size), jnp.float32)
    c = jax.random.normal(keys[11], (batch, condition_size), jnp.float32)

    # Built ONCE, reused for every forward call (hoisted out of the call path).
    packed = prepare_params(params, input_size, condition_size, latent_size)

    mu, logvar = jax.block_until_ready(
        encoder_forward(x, c, packed, latent_size=latent_size))
    # Second call: cached packed weights + cached executable (no re-prep, no
    # re-trace) — this is the steady-state per-generation path.
    mu, logvar = jax.block_until_ready(
        encoder_forward(x, c, packed, latent_size=latent_size))

    mu_ref, logvar_ref = torch_reference(x, c, params)

    # bf16 matmuls with f32 accumulation: slightly loosened tolerances.
    np.testing.assert_allclose(np.asarray(mu), np.asarray(mu_ref),
                               rtol=3e-2, atol=5e-3)
    np.testing.assert_allclose(np.asarray(logvar), np.asarray(logvar_ref),
                               rtol=3e-2, atol=5e-3)
    print("KERNEL_OK")
</pallas_src>

<mosaic_0001>
module attributes {stable_mosaic.version = 11 : i64} {
  func.func @encoder_kernel(%arg0: i32, %arg1: memref<8x16xbf16, #tpu.memory_space<vmem>>, %arg2: memref<8x128xbf16, #tpu.memory_space<vmem>>, %arg3: memref<16x512xbf16, #tpu.memory_space<vmem>>, %arg4: memref<512x1024xbf16, #tpu.memory_space<vmem>>, %arg5: memref<1024x256xbf16, #tpu.memory_space<vmem>>, %arg6: memref<128x256xbf16, #tpu.memory_space<vmem>>, %arg7: memref<256x128xbf16, #tpu.memory_space<vmem>>, %arg8: memref<4x1024xf32, #tpu.memory_space<vmem>>, %arg9: memref<8x128xf32, #tpu.memory_space<vmem>>) attributes {dimension_semantics = [#tpu.dimension_semantics<parallel>], iteration_bounds = array<i64: 1>, scalar_prefetch = 0 : i64, scratch_operands = 0 : i64, tpu.core_type = #tpu.core_type<tc>, window_params = [{transform_indices = @transform_0, window_bounds = array<i64: 8, 16>}, {transform_indices = @transform_1, window_bounds = array<i64: 8, 128>}, {pipeline_mode = #tpu.pipeline_mode<synchronous>, transform_indices = @transform_2, window_bounds = array<i64: 16, 512>}, {pipeline_mode = #tpu.pipeline_mode<synchronous>, transform_indices = @transform_3, window_bounds = array<i64: 512, 1024>}, {pipeline_mode = #tpu.pipeline_mode<synchronous>, transform_indices = @transform_4, window_bounds = array<i64: 1024, 256>}, {pipeline_mode = #tpu.pipeline_mode<synchronous>, transform_indices = @transform_5, window_bounds = array<i64: 128, 256>}, {pipeline_mode = #tpu.pipeline_mode<synchronous>, transform_indices = @transform_6, window_bounds = array<i64: 256, 128>}, {pipeline_mode = #tpu.pipeline_mode<synchronous>, transform_indices = @transform_7, window_bounds = array<i64: 4, 1024>}, {transform_indices = @transform_8, window_bounds = array<i64: 8, 128>}]} {
    %c0 = arith.constant 0 : index
    %c0_0 = arith.constant 0 : index
    %0 = vector.load %arg1[%c0, %c0_0] : memref<8x16xbf16, #tpu.memory_space<vmem>>, vector<8x16xbf16>
    %c0_1 = arith.constant 0 : index
    %c0_2 = arith.constant 0 : index
    %1 = vector.load %arg3[%c0_1, %c0_2] : memref<16x512xbf16, #tpu.memory_space<vmem>>, vector<16x512xbf16>
    %cst = arith.constant dense<0.000000e+00> : vector<8x512xf32>
    %2 = tpu.matmul %0, %1, %cst {dimension_numbers = #tpu.dot_dimension_numbers<[1], [0], [0], [1], [0, 0, 1, 1], [], []>} : vector<8x16xbf16>, vector<16x512xbf16>, vector<8x512xf32> -> vector<8x512xf32>
    %c0_3 = arith.constant 0 : index
    %c0_4 = arith.constant 0 : index
    %3 = vector.load %arg8[%c0_3, %c0_4] : memref<4x1024xf32, #tpu.memory_space<vmem>>, vector<1x512xf32>
    %4 = vector.broadcast %3 : vector<1x512xf32> to vector<8x512xf32>
    %5 = arith.addf %2, %4 : vector<8x512xf32>
    %cst_5 = arith.constant 0.000000e+00 : f32
    %6 = vector.broadcast %cst_5 : f32 to vector<8x512xf32>
    %7 = arith.maximumf %5, %6 : vector<8x512xf32>
    %8 = arith.truncf %7 : vector<8x512xf32> to vector<8x512xbf16>
    %c0_6 = arith.constant 0 : index
    %c0_7 = arith.constant 0 : index
    %9 = vector.load %arg4[%c0_6, %c0_7] : memref<512x1024xbf16, #tpu.memory_space<vmem>>, vector<512x1024xbf16>
    %cst_8 = arith.constant dense<0.000000e+00> : vector<8x1024xf32>
    %10 = tpu.matmul %8, %9, %cst_8 {dimension_numbers = #tpu.dot_dimension_numbers<[1], [0], [0], [1], [0, 0, 1, 1], [], []>} : vector<8x512xbf16>, vector<512x1024xbf16>, vector<8x1024xf32> -> vector<8x1024xf32>
    %c1 = arith.constant 1 : index
    %c0_9 = arith.constant 0 : index
    %11 = vector.load %arg8[%c1, %c0_9] : memref<4x1024xf32, #tpu.memory_space<vmem>>, vector<1x1024xf32>
    %12 = vector.broadcast %11 : vector<1x1024xf32> to vector<8x1024xf32>
    %13 = arith.addf %10, %12 : vector<8x1024xf32>
    %cst_10 = arith.constant 0.000000e+00 : f32
    %14 = vector.broadcast %cst_10 : f32 to vector<8x1024xf32>
    %15 = arith.maximumf %13, %14 : vector<8x1024xf32>
    %16 = arith.truncf %15 : vector<8x1024xf32> to vector<8x1024xbf16>
    %c0_11 = arith.constant 0 : index
    %c0_12 = arith.constant 0 : index
    %17 = vector.load %arg5[%c0_11, %c0_12] : memref<1024x256xbf16, #tpu.memory_space<vmem>>, vector<1024x256xbf16>
    %cst_13 = arith.constant dense<0.000000e+00> : vector<8x256xf32>
    %18 = tpu.matmul %16, %17, %cst_13 {dimension_numbers = #tpu.dot_dimension_numbers<[1], [0], [0], [1], [0, 0, 1, 1], [], []>} : vector<8x1024xbf16>, vector<1024x256xbf16>, vector<8x256xf32> -> vector<8x256xf32>
    %c0_14 = arith.constant 0 : index
    %c0_15 = arith.constant 0 : index
    %19 = vector.load %arg2[%c0_14, %c0_15] : memref<8x128xbf16, #tpu.memory_space<vmem>>, vector<8x128xbf16>
    %c0_16 = arith.constant 0 : index
    %c0_17 = arith.constant 0 : index
    %20 = vector.load %arg6[%c0_16, %c0_17] : memref<128x256xbf16, #tpu.memory_space<vmem>>, vector<128x256xbf16>
    %cst_18 = arith.constant dense<0.000000e+00> : vector<8x256xf32>
    %21 = tpu.matmul %19, %20, %cst_18 {dimension_numbers = #tpu.dot_dimension_numbers<[1], [0], [0], [1], [0, 0, 1, 1], [], []>} : vector<8x128xbf16>, vector<128x256xbf16>, vector<8x256xf32> -> vector<8x256xf32>
    %22 = arith.addf %18, %21 : vector<8x256xf32>
    %c2 = arith.constant 2 : index
    %c0_19 = arith.constant 0 : index
    %23 = vector.load %arg8[%c2, %c0_19] : memref<4x1024xf32, #tpu.memory_space<vmem>>, vector<1x256xf32>
    %24 = vector.broadcast %23 : vector<1x256xf32> to vector<8x256xf32>
    %25 = arith.addf %22, %24 : vector<8x256xf32>
    %cst_20 = arith.constant 0.000000e+00 : f32
    %26 = vector.broadcast %cst_20 : f32 to vector<8x256xf32>
    %27 = arith.maximumf %25, %26 : vector<8x256xf32>
    %28 = arith.truncf %27 : vector<8x256xf32> to vector<8x256xbf16>
    %c0_21 = arith.constant 0 : index
    %c0_22 = arith.constant 0 : index
    %29 = vector.load %arg7[%c0_21, %c0_22] : memref<256x128xbf16, #tpu.memory_space<vmem>>, vector<256x128xbf16>
    %cst_23 = arith.constant dense<0.000000e+00> : vector<8x128xf32>
    %30 = tpu.matmul %28, %29, %cst_23 {dimension_numbers = #tpu.dot_dimension_numbers<[1], [0], [0], [1], [0, 0, 1, 1], [], []>} : vector<8x256xbf16>, vector<256x128xbf16>, vector<8x128xf32> -> vector<8x128xf32>
    %c3 = arith.constant 3 : index
    %c0_24 = arith.constant 0 : index
    %31 = vector.load %arg8[%c3, %c0_24] : memref<4x1024xf32, #tpu.memory_space<vmem>>, vector<1x128xf32>
    %32 = vector.broadcast %31 : vector<1x128xf32> to vector<8x128xf32>
    %33 = arith.addf %30, %32 : vector<8x128xf32>
    %c0_25 = arith.constant 0 : index
    %c0_26 = arith.constant 0 : index
    %34 = vector.load %arg9[%c0_25, %c0_26] : memref<8x128xf32, #tpu.memory_space<vmem>>, vector<8x128xf32>
    tpu.vector_store %arg9[%c0_25, %c0_26], %33 {strides = array<i32>} : memref<8x128xf32, #tpu.memory_space<vmem>>, vector<8x128xf32>,
    return
  }
  func.func @transform_0(%arg0: i32) -> (i32, i32) {
    %c0_i32 = arith.constant 0 : i32
    %c0_i32_0 = arith.constant 0 : i32
    return %arg0, %c0_i32 : i32, i32
  }
  func.func @transform_1(%arg0: i32) -> (i32, i32) {
    %c0_i32 = arith.constant 0 : i32
    %c0_i32_0 = arith.constant 0 : i32
    return %arg0, %c0_i32 : i32, i32
  }
  func.func @transform_2(%arg0: i32) -> (i32, i32) {
    %c0_i32 = arith.constant 0 : i32
    %c0_i32_0 = arith.constant 0 : i32
    %c0_i32_1 = arith.constant 0 : i32
    return %c0_i32, %c0_i32_0 : i32, i32
  }
  func.func @transform_3(%arg0: i32) -> (i32, i32) {
    %c0_i32 = arith.constant 0 : i32
    %c0_i32_0 = arith.constant 0 : i32
    %c0_i32_1 = arith.constant 0 : i32
    return %c0_i32, %c0_i32_0 : i32, i32
  }
  func.func @transform_4(%arg0: i32) -> (i32, i32) {
    %c0_i32 = arith.constant 0 : i32
    %c0_i32_0 = arith.constant 0 : i32
    %c0_i32_1 = arith.constant 0 : i32
    return %c0_i32, %c0_i32_0 : i32, i32
  }
  func.func @transform_5(%arg0: i32) -> (i32, i32) {
    %c0_i32 = arith.constant 0 : i32
    %c0_i32_0 = arith.constant 0 : i32
    %c0_i32_1 = arith.constant 0 : i32
    return %c0_i32, %c0_i32_0 : i32, i32
  }
  func.func @transform_6(%arg0: i32) -> (i32, i32) {
    %c0_i32 = arith.constant 0 : i32
    %c0_i32_0 = arith.constant 0 : i32
    %c0_i32_1 = arith.constant 0 : i32
    return %c0_i32, %c0_i32_0 : i32, i32
  }
  func.func @transform_7(%arg0: i32) -> (i32, i32) {
    %c0_i32 = arith.constant 0 : i32
    %c0_i32_0 = arith.constant 0 : i32
    %c0_i32_1 = arith.constant 0 : i32
    return %c0_i32, %c0_i32_0 : i32, i32
  }
  func.func @transform_8(%arg0: i32) -> (i32, i32) {
    %c0_i32 = arith.constant 0 : i32
    %c0_i32_0 = arith.constant 0 : i32
    return %arg0, %c0_i32 : i32, i32
  }
}

</mosaic_0001>

<bundles_post_ra>
// kernel: encoder_forward.1
= control target key start
LH: loop header
LB: loop body
LE: loop exit
PB: predicated region body
PF: predicated region fallthrough
CT: control target
= control target key end

     0   :  { %13 = vsyncpa [#allocation3], 0  ;;  %s4530_s0 = inlined_call_operand.vmem [shape: bf16[8,16], index: 0, kind: input, shape index: {}]   ;;  %s4531_s1 = inlined_call_operand.vmem [shape: bf16[8,128], index: 1, kind: input, shape index: {}]   ;;  %s4532_s2 = inlined_call_operand.hbm [shape: bf16[16,512], index: 2, kind: input, shape index: {}]   ;;  %s4533_s3 = inlined_call_operand.hbm [shape: bf16[512,1024], index: 3, kind: input, shape index: {}]   ;;  %s4534_s4 = inlined_call_operand.hbm [shape: bf16[1024,256], index: 4, kind: input, shape index: {}]   ;;  %s4535_s5 = inlined_call_operand.hbm [shape: bf16[128,256], index: 5, kind: input, shape index: {}]   ;;  %s4536_s6 = inlined_call_operand.hbm [shape: bf16[256,128], index: 6, kind: input, shape index: {}]   ;;  %s4537_s7 = inlined_call_operand.hbm [shape: f32[4,1024], index: 7, kind: input, shape index: {}]   ;;  %s4538_s8 = inlined_call_operand.vmem [shape: f32[8,128], index: 8, kind: output, shape index: {}]  }
   0x1   :  { %14 = vsyncpa [#allocation5], 0 }
   0x2   :  { %15 = vsyncpa [#allocation8], 0 }
   0x3   :  { %16 = vsyncpa [#allocation11], 0  ;;  %s4307_s27 = smov [#allocation4]   ;;  %s4167_s9 = scalar_lea.hbm %s4533_s3, 32768 }
   0x4   :  { %s38_s28 = sshll.u32 %s4307_s27, 4  ;;  %p4168_p0 = scmp.ne.s32.totalorder %s4533_s3, %s4167_s9  ;;  %s39_s28 = int_to_ptr.vmem [resolvable:$true] %s38_s28 }
   0x5   :  { %p4171_p1 = scmp.lt.u32.totalorder %s4167_s9, %s4533_s3 }
   0x7   :  { %p4173_p2 = pnand %p4171_p1, %p4168_p0 }
   0x9   :  { %4176 = shalt.err (!%p4173_p2)
}
   0xa   :  { %s4177_s14 = scalar_lea.vmem %s39_s28, 32768  ;;  %p4182_p4 = scmp.lt.s32.totalorder %s39_s28, %s39_s28 }
   0xb   :  { %p4178_p3 = scmp.ne.s32.totalorder %s39_s28, %s4177_s14  ;;  %p4183_p5 = scmp.lt.s32.totalorder %s4177_s14, %s4177_s14 }
   0xd   :  { %p4184_p6 = por %p4183_p5, %p4182_p4 }
   0xf   :  { %p4185_p7 = pnand %p4184_p6, %p4178_p3 }
  0x11   :  { %4188 = shalt.err (!%p4185_p7)
}
  0x12   :  { %s4308_s15 = smov 512   ;;  %s4309_s16 = smov 32  }
  0x13   :  { %44 = dma.hbm_to_vmem [thread:$0]  %s4533_s3, 32768, %s39_s28, [#allocation5], %s4308_s15, %s4308_s15, %s4309_s16  }
  0x14   :  { %s4310_s19 = smov [#allocation7]   ;;  %s4311_s21 = smov [#allocation2]  }
  0x15   :  { %s62_s20 = sshll.u32 %s4310_s19, 4  ;;  %s26_s22 = sshll.u32 %s4311_s21, 4  ;;  %s63_s20 = int_to_ptr.vmem [resolvable:$true] %s62_s20  ;;  %s27_s22 = int_to_ptr.vmem [resolvable:$true] %s26_s22 }
  0x16   :  { %s4189_s25 = scalar_lea.hbm %s4535_s5, 2048 }
  0x17   :  { %p4190_p8 = scmp.ne.s32.totalorder %s4535_s5, %s4189_s25  ;;  %p4193_p9 = scmp.lt.u32.totalorder %s4189_s25, %s4535_s5 }
  0x19   :  { %p4195_p10 = pnand %p4193_p9, %p4190_p8 }
  0x1b   :  { %4198 = shalt.err (!%p4195_p10)
}
  0x1c   :  { %s4199_s3 = scalar_lea.vmem %s63_s20, 2048  ;;  %p4204_p12 = scmp.lt.s32.totalorder %s63_s20, %s63_s20 }
  0x1d   :  { %p4200_p11 = scmp.ne.s32.totalorder %s63_s20, %s4199_s3  ;;  %p4205_p13 = scmp.lt.s32.totalorder %s4199_s3, %s4199_s3 }
  0x1f   :  { %p4206_p0 = por %p4205_p13, %p4204_p12 }
  0x21   :  { %p4207_p1 = pnand %p4206_p0, %p4200_p11 }
  0x23   :  { %4210 = shalt.err (!%p4207_p1)
}
  0x24   :  { %s4312_s28 = smov 128   ;;  %s4313_s9 = smov 8  }
  0x25   :  { %68 = dma.hbm_to_vmem [thread:$0]  %s4535_s5, 2048, %s63_s20, [#allocation8], %s4312_s28, %s4312_s28, %s4313_s9  }
  0x26   :  { %s4211_s14 = scalar_lea.hbm %s4532_s2, 512 }
  0x27   :  { %p4212_p2 = scmp.ne.s32.totalorder %s4532_s2, %s4211_s14  ;;  %p4215_p3 = scmp.lt.u32.totalorder %s4211_s14, %s4532_s2 }
  0x29   :  { %p4217_p4 = pnand %p4215_p3, %p4212_p2 }
  0x2b   :  { %4220 = shalt.err (!%p4217_p4)
}
  0x2c   :  { %s4221_s19 = scalar_lea.vmem %s27_s22, 512  ;;  %p4226_p6 = scmp.lt.s32.totalorder %s27_s22, %s27_s22 }
  0x2d   :  { %p4222_p5 = scmp.ne.s32.totalorder %s27_s22, %s4221_s19  ;;  %p4227_p7 = scmp.lt.s32.totalorder %s4221_s19, %s4221_s19 }
  0x2f   :  { %p4228_p8 = por %p4227_p7, %p4226_p6 }
  0x31   :  { %p4229_p9 = pnand %p4228_p8, %p4222_p5 }
  0x33   :  { %4232 = shalt.err (!%p4229_p9)
}
  0x34   :  { %s4314_s5 = smov 256   ;;  %s4315_s20 = smov 16  }
  0x35   :  { %32 = dma.hbm_to_vmem [thread:$0]  %s4532_s2, 512, %s27_s22, [#allocation3], %s4314_s5, %s4314_s5, %s4315_s20  }
  0x36   :  { %s4316_s24 = smov [#allocation6]   ;;  %s4317_s26 = smov [#allocation9]  }
  0x37   :  { %s50_s25 = sshll.u32 %s4316_s24, 4  ;;  %s74_s27 = sshll.u32 %s4317_s26, 4  ;;  %s51_s25 = int_to_ptr.vmem [resolvable:$true] %s50_s25  ;;  %s75_s27 = int_to_ptr.vmem [resolvable:$true] %s74_s27 }
  0x38   :  { %s4233_s3 = scalar_lea.hbm %s4534_s4, 16384 }
  0x39   :  { %p4234_p10 = scmp.ne.s32.totalorder %s4534_s4, %s4233_s3  ;;  %p4237_p11 = scmp.lt.u32.totalorder %s4233_s3, %s4534_s4 }
  0x3b   :  { %p4239_p12 = pnand %p4237_p11, %p4234_p10 }
  0x3d   :  { %4242 = shalt.err (!%p4239_p12)
}
  0x3e   :  { %s4243_s2 = scalar_lea.vmem %s51_s25, 16384  ;;  %p4248_p0 = scmp.lt.s32.totalorder %s51_s25, %s51_s25 }
  0x3f   :  { %p4244_p13 = scmp.ne.s32.totalorder %s51_s25, %s4243_s2  ;;  %p4249_p1 = scmp.lt.s32.totalorder %s4243_s2, %s4243_s2 }
  0x41   :  { %p4250_p2 = por %p4249_p1, %p4248_p0 }
  0x43   :  { %p4251_p3 = pnand %p4250_p2, %p4244_p13 }
  0x45   :  { %4254 = shalt.err (!%p4251_p3)
}
  0x46   :  { %56 = dma.hbm_to_vmem [thread:$0]  %s4534_s4, 16384, %s51_s25, [#allocation5], %s4312_s28, %s4312_s28, %s4313_s9  }
  0x47   :  { %s4255_s17 = scalar_lea.hbm %s4536_s6, 2048 }
  0x48   :  { %p4256_p4 = scmp.ne.s32.totalorder %s4536_s6, %s4255_s17  ;;  %p4259_p5 = scmp.lt.u32.totalorder %s4255_s17, %s4536_s6 }
  0x4a   :  { %p4261_p6 = pnand %p4259_p5, %p4256_p4 }
  0x4c   :  { %4264 = shalt.err (!%p4261_p6)
}
  0x4d   :  { %s4265_s21 = scalar_lea.vmem %s75_s27, 2048  ;;  %p4270_p8 = scmp.lt.s32.totalorder %s75_s27, %s75_s27 }
  0x4e   :  { %p4266_p7 = scmp.ne.s32.totalorder %s75_s27, %s4265_s21  ;;  %p4271_p9 = scmp.lt.s32.totalorder %s4265_s21, %s4265_s21 }
  0x50   :  { %p4272_p10 = por %p4271_p9, %p4270_p8 }
  0x52   :  { %p4273_p11 = pnand %p4272_p10, %p4266_p7 }
  0x54   :  { %4276 = shalt.err (!%p4273_p11)
}
  0x55   :  { %s4318_s4 = smov 64   ;;  %s4319_s28 = smov 4  }
  0x56   :  { %80 = dma.hbm_to_vmem [thread:$0]  %s4536_s6, 2048, %s75_s27, [#allocation8], %s4318_s4, %s4318_s4, %s4319_s28  }
  0x57   :  { %s4320_s24 = smov [#allocation10]   ;;  %s4277_s30 = scalar_lea.hbm %s4537_s7, 512 }
  0x58   :  { %s87_s25 = sshll.u32 %s4320_s24, 4  ;;  %p4278_p12 = scmp.ne.s32.totalorder %s4537_s7, %s4277_s30  ;;  %s88_s25 = int_to_ptr.vmem [resolvable:$true] %s87_s25 }
  0x59   :  { %p4281_p13 = scmp.lt.u32.totalorder %s4277_s30, %s4537_s7 }
  0x5b   :  { %p4283_p0 = pnand %p4281_p13, %p4278_p12 }
  0x5d   :  { %4286 = shalt.err (!%p4283_p0)
}
  0x5e   :  { %s4287_s13 = scalar_lea.vmem %s88_s25, 512  ;;  %p4292_p2 = scmp.lt.s32.totalorder %s88_s25, %s88_s25 }
  0x5f   :  { %p4288_p1 = scmp.ne.s32.totalorder %s88_s25, %s4287_s13  ;;  %p4293_p3 = scmp.lt.s32.totalorder %s4287_s13, %s4287_s13 }
  0x61   :  { %p4294_p4 = por %p4293_p3, %p4292_p2 }
  0x63   :  { %p4295_p5 = pnand %p4294_p4, %p4288_p1 }
  0x65   :  { %4298 = shalt.err (!%p4295_p5)
}
  0x66   :  { %90 = dma.hbm_to_vmem [thread:$0]  %s4537_s7, 512, %s88_s25, [#allocation11]  }
  0x67   :  { %4299 = dma.done.wait [#allocation3], 512  }
  0x68   :  { %4300 = vsyncadd [#allocation3], 4294966784 }
  0x69   :  { %4301 = dma.done.wait [#allocation5], 49152  }
  0x6a   :  { %4302 = vsyncadd [#allocation5], 4294918144 }
  0x6b   :  { %4303 = dma.done.wait [#allocation8], 4096  }
  0x6c   :  { %4304 = vsyncadd [#allocation8], 4294963200 }
  0x6d   :  { %4305 = dma.done.wait [#allocation11], 512  }
  0x6e   :  { %4306 = vsyncadd [#allocation11], 4294966784  ;;  %v4321_v0 = vmov 0   ;;  %v3929_v1 = vld [vmem:[#allocation2 + $0x4] ss:$16 sps:$4 sm:$0xff]   ;;  %vm157_vm0 = vcmask 130048  }
  0x6f   :  { %193 = vmatprep.mubr.bf16.mxu0 %v4321_v0  ;;  %234 = vmatprep.mubr.bf16.mxu1 %v4321_v0  ;;  %v3931_v2 = vld [vmem:[#allocation2] ss:$16 sps:$4 sm:$0xff]   ;;  %v3932_v4 = vld [vmem:[#allocation2 + $0xc] ss:$16 sps:$4 sm:$0xff]   ;;  %v3934_v5 = vld [vmem:[#allocation2 + $0x8] ss:$16 sps:$4 sm:$0xff]  }
  0x70   :  { %v110_v3 = vld [vmem:[%s4530_s0] sm:$0xf]  ;;  %161 = vmatprep.subr.bf16.mxu0 %v3929_v1  ;;  %v252_v8 = vld [vmem:[#allocation4 + $0x8] sm:$0xff]  ;;  %202 = vmatprep.subr.bf16.mxu1 %v3932_v4 }
  0x71   :  { %162 = vmatpush1.bf16.msra.mxu0 %v3931_v2  ;;  %v251_v6 = vld [vmem:[#allocation4] sm:$0xff]  ;;  %v256_v11 = vld [vmem:[#allocation4 + $0x28] sm:$0xff]  ;;  %203 = vmatpush1.bf16.msra.mxu1 %v3934_v5 }
  0x72   :  { %v255_v7 = vld [vmem:[#allocation4 + $0x20] sm:$0xff]  ;;  %v3453_v14 = vcombine.low %v252_v8, %v256_v11  ;;  %v3454_v15 = vcombine.high %v252_v8, %v256_v11  ;;  %v260_v17 = vld [vmem:[#allocation4 + $0x48] sm:$0xff] }
  0x73   :  { %v3451_v9 = vcombine.low %v251_v6, %v255_v7  ;;  %v3452_v10 = vcombine.high %v251_v6, %v255_v7  ;;  %v259_v12 = vld [vmem:[#allocation4 + $0x40] sm:$0xff]  ;;  %v264_v18 = vld [vmem:[#allocation4 + $0x68] sm:$0xff] }
  0x74   :  { %v263_v13 = vld [vmem:[#allocation4 + $0x60] sm:$0xff]  ;;  %3449 = vmatmul.mubr.msk.bf16.vlgmr.msra.gmra.mrb[0].mxu0 %vm157_vm0, %v110_v3  ;;  %v3462_v20 = vcombine.high %v260_v17, %v264_v18  ;;  %1912 = vmatprep.subr.bf16.mxu1 %v3454_v15  ;;  %v268_v23 = vld [vmem:[#allocation4 + $0x88] sm:$0xff]  ;;  %v3461_v26 = vcombine.low %v260_v17, %v264_v18 }
  0x75   :  { %v3460_v16 = vcombine.high %v259_v12, %v263_v13  ;;  %v267_v19 = vld [vmem:[#allocation4 + $0x80] sm:$0xff]  ;;  %1830 = vmatprep.subr.bf16.mxu0 %v3452_v10  ;;  %v3459_v22 = vcombine.low %v259_v12, %v263_v13  ;;  %v272_v24 = vld [vmem:[#allocation4 + $0xa8] sm:$0xff]  ;;  %3450 = vmatmul.mubr.msk.bf16.vlgmr.msra.gmra.mrb[0].mxu1 %vm157_vm0, %v110_v3 }
  0x76   :  { %v271_v21 = vld [vmem:[#allocation4 + $0xa0] sm:$0xff]  ;;  %1831 = vmatpush1.bf16.msra.mxu0 %v3451_v9  ;;  %1913 = vmatpush1.bf16.msra.mxu1 %v3453_v14  ;;  %v3470_v29 = vcombine.high %v268_v23, %v272_v24  ;;  %v276_v31 = vld [vmem:[#allocation4 + $0xc8] sm:$0xff]  ;;  %v3469_v34 = vcombine.low %v268_v23, %v272_v24 }
  0x77   :  { %1832 = vmatprep.subr.bf16.mxu0 %v3460_v16  ;;  %v3468_v25 = vcombine.high %v267_v19, %v271_v21  ;;  %v275_v27 = vld [vmem:[#allocation4 + $0xc0] sm:$0xff]  ;;  %1914 = vmatprep.subr.bf16.mxu1 %v3462_v20  ;;  %v3467_v30 = vcombine.low %v267_v19, %v271_v21  ;;  %v280_v32 = vld [vmem:[#allocation4 + $0xe8] sm:$0xff] }
  0x78   :  { %v279_v28 = vld [vmem:[#allocation4 + $0xe0] sm:$0xff]  ;;  %v3478_v37 = vcombine.high %v276_v31, %v280_v32  ;;  %v284_v39 = vld [vmem:[#allocation4 + $0x108] sm:$0xff]  ;;  %v3477_v42 = vcombine.low %v276_v31, %v280_v32 }
  0x79   :  { %v3476_v33 = vcombine.high %v275_v27, %v279_v28  ;;  %v283_v35 = vld [vmem:[#allocation4 + $0x100] sm:$0xff]  ;;  %v3475_v38 = vcombine.low %v275_v27, %v279_v28  ;;  %v288_v40 = vld [vmem:[#allocation4 + $0x128] sm:$0xff] }
  0x7a   :  { %1833 = vmatpush1.bf16.msra.mxu0 %v3459_v22  ;;  %1915 = vmatpush1.bf16.msra.mxu1 %v3461_v26  ;;  %v287_v36 = vld [vmem:[#allocation4 + $0x120] sm:$0xff]  ;;  %v3486_v45 = vcombine.high %v284_v39, %v288_v40  ;;  %v292_v47 = vld [vmem:[#allocation4 + $0x148] sm:$0xff]  ;;  %v3485_v51 = vcombine.low %v284_v39, %v288_v40 }
  0x7b   :  { %1834 = vmatprep.subr.bf16.mxu0 %v3468_v25  ;;  %1916 = vmatprep.subr.bf16.mxu1 %v3470_v29  ;;  %v3484_v41 = vcombine.high %v283_v35, %v287_v36  ;;  %v291_v43 = vld [vmem:[#allocation4 + $0x140] sm:$0xff]  ;;  %v3483_v46 = vcombine.low %v283_v35, %v287_v36  ;;  %v296_v48 = vld [vmem:[#allocation4 + $0x168] sm:$0xff] }
  0x7c   :  { %v295_v44 = vld [vmem:[#allocation4 + $0x160] sm:$0xff]  ;;  %v300_v53 = vld [vmem:[#allocation4 + $0x188] sm:$0xff]  ;;  %v3494_v55 = vcombine.high %v292_v47, %v296_v48  ;;  %v3493_v60 = vcombine.low %v292_v47, %v296_v48 }
  0x7d   :  { %v3492_v49 = vcombine.high %v291_v43, %v295_v44  ;;  %v299_v50 = vld [vmem:[#allocation4 + $0x180] sm:$0xff]  ;;  %v304_v54 = vld [vmem:[#allocation4 + $0x1a8] sm:$0xff]  ;;  %v3491_v56 = vcombine.low %v291_v43, %v295_v44 }
  0x7e   :  { %1835 = vmatpush1.bf16.msra.mxu0 %v3467_v30  ;;  %1917 = vmatpush1.bf16.msra.mxu1 %v3469_v34  ;;  %v303_v52 = vld [vmem:[#allocation4 + $0x1a0] sm:$0xff]  ;;  %v308_v61 = vld [vmem:[#allocation4 + $0x1c8] sm:$0xff]  ;;  %v3502_v63 = vcombine.high %v300_v53, %v304_v54  ;;  %v3501_v5 = vcombine.low %v300_v53, %v304_v54 }
  0x7f   :  { %1836 = vmatprep.subr.bf16.mxu0 %v3476_v33  ;;  %1918 = vmatprep.subr.bf16.mxu1 %v3478_v37  ;;  %v307_v57 = vld [vmem:[#allocation4 + $0x1c0] sm:$0xff]  ;;  %v3500_v59 = vcombine.high %v299_v50, %v303_v52  ;;  %v312_v62 = vld [vmem:[#allocation4 + $0x1e8] sm:$0xff]  ;;  %v3499_v1 = vcombine.low %v299_v50, %v303_v52 }
  0x80   :  { %v311_v58 = vld [vmem:[#allocation4 + $0x1e0] sm:$0xff]  ;;  %v316_v6 = vld [vmem:[#allocation4 + $0x208] sm:$0xff]  ;;  %v3510_v8 = vcombine.high %v308_v61, %v312_v62  ;;  %v3509_v13 = vcombine.low %v308_v61, %v312_v62 }
  0x81   :  { %v315_v2 = vld [vmem:[#allocation4 + $0x200] sm:$0xff]  ;;  %v3508_v4 = vcombine.high %v307_v57, %v311_v58  ;;  %v320_v7 = vld [vmem:[#allocation4 + $0x228] sm:$0xff]  ;;  %v3507_v9 = vcombine.low %v307_v57, %v311_v58 }
  0x82   :  { %1837 = vmatpush1.bf16.msra.mxu0 %v3475_v38  ;;  %1919 = vmatpush1.bf16.msra.mxu1 %v3477_v42  ;;  %v319_v3 = vld [vmem:[#allocation4 + $0x220] sm:$0xff]  ;;  %v324_v14 = vld [vmem:[#allocation4 + $0x248] sm:$0xff]  ;;  %v3518_v16 = vcombine.high %v316_v6, %v320_v7  ;;  %v3517_v21 = vcombine.low %v316_v6, %v320_v7 }
  0x83   :  { %1838 = vmatprep.subr.bf16.mxu0 %v3484_v41  ;;  %1920 = vmatprep.subr.bf16.mxu1 %v3486_v45  ;;  %v323_v10 = vld [vmem:[#allocation4 + $0x240] sm:$0xff]  ;;  %v3516_v12 = vcombine.high %v315_v2, %v319_v3  ;;  %v328_v15 = vld [vmem:[#allocation4 + $0x268] sm:$0xff]  ;;  %v3515_v17 = vcombine.low %v315_v2, %v319_v3 }
  0x84   :  { %v327_v11 = vld [vmem:[#allocation4 + $0x260] sm:$0xff]  ;;  %v332_v22 = vld [vmem:[#allocation4 + $0x288] sm:$0xff]  ;;  %v3526_v24 = vcombine.high %v324_v14, %v328_v15  ;;  %v3525_v29 = vcombine.low %v324_v14, %v328_v15 }
  0x85   :  { %v331_v18 = vld [vmem:[#allocation4 + $0x280] sm:$0xff]  ;;  %v3524_v20 = vcombine.high %v323_v10, %v327_v11  ;;  %v336_v23 = vld [vmem:[#allocation4 + $0x2a8] sm:$0xff]  ;;  %v3523_v25 = vcombine.low %v323_v10, %v327_v11 }
  0x86   :  { %1839 = vmatpush1.bf16.msra.mxu0 %v3483_v46  ;;  %1921 = vmatpush1.bf16.msra.mxu1 %v3485_v51  ;;  %v335_v19 = vld [vmem:[#allocation4 + $0x2a0] sm:$0xff]  ;;  %v340_v30 = vld [vmem:[#allocation4 + $0x2c8] sm:$0xff]  ;;  %v3534_v32 = vcombine.high %v332_v22, %v336_v23  ;;  %v3533_v37 = vcombine.low %v332_v22, %v336_v23 }
  0x87   :  { %1840 = vmatprep.subr.bf16.mxu0 %v3492_v49  ;;  %1922 = vmatprep.subr.bf16.mxu1 %v3494_v55  ;;  %v339_v26 = vld [vmem:[#allocation4 + $0x2c0] sm:$0xff]  ;;  %v3532_v28 = vcombine.high %v331_v18, %v335_v19  ;;  %v344_v31 = vld [vmem:[#allocation4 + $0x2e8] sm:$0xff]  ;;  %v3531_v33 = vcombine.low %v331_v18, %v335_v19 }
  0x88   :  { %v343_v27 = vld [vmem:[#allocation4 + $0x2e0] sm:$0xff]  ;;  %v348_v38 = vld [vmem:[#allocation4 + $0x308] sm:$0xff]  ;;  %v3542_v40 = vcombine.high %v340_v30, %v344_v31  ;;  %v3541_v45 = vcombine.low %v340_v30, %v344_v31 }
  0x89   :  { %v347_v34 = vld [vmem:[#allocation4 + $0x300] sm:$0xff]  ;;  %v3540_v36 = vcombine.high %v339_v26, %v343_v27  ;;  %v352_v39 = vld [vmem:[#allocation4 + $0x328] sm:$0xff]  ;;  %v3539_v41 = vcombine.low %v339_v26, %v343_v27 }
  0x8a   :  { %1841 = vmatpush1.bf16.msra.mxu0 %v3491_v56  ;;  %1923 = vmatpush1.bf16.msra.mxu1 %v3493_v60  ;;  %v351_v35 = vld [vmem:[#allocation4 + $0x320] sm:$0xff]  ;;  %v356_v46 = vld [vmem:[#allocation4 + $0x348] sm:$0xff]  ;;  %v3550_v48 = vcombine.high %v348_v38, %v352_v39  ;;  %v3549_v51 = vcombine.low %v348_v38, %v352_v39 }
  0x8b   :  { %1842 = vmatprep.subr.bf16.mxu0 %v3500_v59  ;;  %1924 = vmatprep.subr.bf16.mxu1 %v3502_v63  ;;  %v355_v42 = vld [vmem:[#allocation4 + $0x340] sm:$0xff]  ;;  %v3548_v44 = vcombine.high %v347_v34, %v351_v35  ;;  %v360_v47 = vld [vmem:[#allocation4 + $0x368] sm:$0xff]  ;;  %v3547_v49 = vcombine.low %v347_v34, %v351_v35 }
  0x8c   :  { %v359_v43 = vld [vmem:[#allocation4 + $0x360] sm:$0xff]  ;;  %v3558_v52 = vcombine.high %v356_v46, %v360_v47  ;;  %v3557_v54 = vcombine.low %v356_v46, %v360_v47  ;;  %v364_v57 = vld [vmem:[#allocation4 + $0x388] sm:$0xff] }
  0x8d   :  { %v3556_v50 = vcombine.high %v355_v42, %v359_v43  ;;  %v3555_v53 = vcombine.low %v355_v42, %v359_v43  ;;  %v363_v55 = vld [vmem:[#allocation4 + $0x380] sm:$0xff]  ;;  %v368_v59 = vld [vmem:[#allocation4 + $0x3a8] sm:$0xff] }
  0x8e   :  { %1843 = vmatpush1.bf16.msra.mxu0 %v3499_v1  ;;  %1925 = vmatpush1.bf16.msra.mxu1 %v3501_v5  ;;  %v367_v56 = vld [vmem:[#allocation4 + $0x3a0] sm:$0xff]  ;;  %v3565_v61 = vcombine.low %v364_v57, %v368_v59  ;;  %v3566_v62 = vcombine.high %v364_v57, %v368_v59  ;;  %v372_v2 = vld [vmem:[#allocation4 + $0x3c8] sm:$0xff] }
  0x8f   :  { %1844 = vmatprep.subr.bf16.mxu0 %v3508_v4  ;;  %1926 = vmatprep.subr.bf16.mxu1 %v3510_v8  ;;  %v3564_v58 = vcombine.high %v363_v55, %v367_v56  ;;  %v3563_v60 = vcombine.low %v363_v55, %v367_v56  ;;  %v371_v63 = vld [vmem:[#allocation4 + $0x3c0] sm:$0xff]  ;;  %v376_v4 = vld [vmem:[#allocation4 + $0x3e8] sm:$0xff] }
  0x90   :  { %v375_v1 = vld [vmem:[#allocation4 + $0x3e0] sm:$0xff]  ;;  %v3573_v6 = vcombine.low %v372_v2, %v376_v4  ;;  %v3574_v7 = vcombine.high %v372_v2, %v376_v4  ;;  %v380_v10 = vld [vmem:[#allocation4 + $0x408] sm:$0xff] }
  0x91   :  { %v3572_v3 = vcombine.high %v371_v63, %v375_v1  ;;  %v3571_v5 = vcombine.low %v371_v63, %v375_v1  ;;  %v379_v8 = vld [vmem:[#allocation4 + $0x400] sm:$0xff]  ;;  %v392_v38 = vld [vmem:[#allocation4 + $0x468] sm:$0xff] }
  0x92   :  { %1845 = vmatpush1.bf16.msra.mxu0 %v3507_v9  ;;  %1927 = vmatpush1.bf16.msra.mxu1 %v3509_v13  ;;  %v383_v9 = vld [vmem:[#allocation4 + $0x420] sm:$0xff]  ;;  %v408_v59 = vld [vmem:[#allocation4 + $0x4e8] sm:$0xff] }
  0x93   :  { %1846 = vmatprep.subr.bf16.mxu0 %v3516_v12  ;;  %1928 = vmatprep.subr.bf16.mxu1 %v3518_v16  ;;  %v3580_v11 = vcombine.high %v379_v8, %v383_v9  ;;  %v384_v12 = vld [vmem:[#allocation4 + $0x428] sm:$0xff]  ;;  %v3579_v13 = vcombine.low %v379_v8, %v383_v9  ;;  %v117_v16 = vlaneseq  ;;  %v395_v47 = vld [vmem:[#allocation4 + $0x480] sm:$0xff] }
  0x94   :  { %v3581_v14 = vcombine.low %v380_v10, %v384_v12  ;;  %v3582_v15 = vcombine.high %v380_v10, %v384_v12  ;;  %v4457_v19 = vld [vmem:[#allocation10] ss:$4 sm:$0xf] }
  0x95   :  { %v403_v56 = vld [vmem:[#allocation4 + $0x4c0] sm:$0xff]  ;;  %v416_v4 = vld [vmem:[#allocation4 + $0x528] sm:$0xff] }
  0x96   :  { %1847 = vmatpush1.bf16.msra.mxu0 %v3515_v17  ;;  %1929 = vmatpush1.bf16.msra.mxu1 %v3517_v21  ;;  %v4452_v17 = vshrl.u32 %v117_v16, 7  ;;  %v407_v57 = vld [vmem:[#allocation4 + $0x4e0] sm:$0xff]  ;;  %v424_v12 = vld [vmem:[#allocation4 + $0x568] sm:$0xff] }
  0x97   :  { %1848 = vmatprep.subr.bf16.mxu0 %v3524_v20  ;;  %1930 = vmatprep.subr.bf16.mxu1 %v3526_v24  ;;  %v411_v1 = vld [vmem:[#allocation4 + $0x500] sm:$0xff] }
  0x98   :  { %v4455_v18 = vsub.s32 0, %v4452_v17  ;;  %v4460_v20 = vsub.s32 1, %v4452_v17  ;;  %v131_v21 = vsub.s32 3, %v4452_v17  ;;  %v415_v2 = vld [vmem:[#allocation4 + $0x520] sm:$0xff] }
  0x99   :  { %v419_v9 = vld [vmem:[#allocation4 + $0x540] sm:$0xff] }
  0x9a   :  { %1849 = vmatpush1.bf16.msra.mxu0 %v3523_v25  ;;  %1931 = vmatpush1.bf16.msra.mxu1 %v3525_v29  ;;  %v120_v22 = vrot.slane %v4457_v19, %v4455_v18  ;;  %v124_v23 = vrot.slane %v4457_v19, %v4460_v20  ;;  %v132_v25 = vrot.slane %v4457_v19, %v131_v21  ;;  %v423_v10 = vld [vmem:[#allocation4 + $0x560] sm:$0xff] }
  0x9b   :  { %1850 = vmatprep.subr.bf16.mxu0 %v3532_v28  ;;  %1932 = vmatprep.subr.bf16.mxu1 %v3534_v32 }
  0x9e   :  { %1851 = vmatpush1.bf16.msra.mxu0 %v3531_v33  ;;  %1933 = vmatpush1.bf16.msra.mxu1 %v3533_v37  ;;  %v387_v33 = vld [vmem:[#allocation4 + $0x440] sm:$0xff]  ;;  %v388_v37 = vld [vmem:[#allocation4 + $0x448] sm:$0xff] }
  0x9f   :  { %1852 = vmatprep.subr.bf16.mxu0 %v3540_v36  ;;  %1934 = vmatprep.subr.bf16.mxu1 %v3542_v40  ;;  %v391_v36 = vld [vmem:[#allocation4 + $0x460] sm:$0xff]  ;;  %v3590_v46 = vcombine.high %v388_v37, %v392_v38 }
  0xa2   :  { %1853 = vmatpush1.bf16.msra.mxu0 %v3539_v41  ;;  %1935 = vmatpush1.bf16.msra.mxu1 %v3541_v45  ;;  %v3588_v45 = vcombine.high %v387_v33, %v391_v36 }
  0xa3   :  { %1854 = vmatprep.subr.bf16.mxu0 %v3548_v44  ;;  %1936 = vmatprep.subr.bf16.mxu1 %v3550_v48  ;;  %v399_v48 = vld [vmem:[#allocation4 + $0x4a0] sm:$0xff] }
  0xa6   :  { %1855 = vmatpush1.bf16.msra.mxu0 %v3547_v49  ;;  %1937 = vmatpush1.bf16.msra.mxu1 %v3549_v51  ;;  %v396_v49 = vld [vmem:[#allocation4 + $0x488] sm:$0xff] }
  0xa7   :  { %1856 = vmatprep.subr.bf16.mxu0 %v3556_v50  ;;  %1938 = vmatprep.subr.bf16.mxu1 %v3558_v52  ;;  %v400_v50 = vld [vmem:[#allocation4 + $0x4a8] sm:$0xff]  ;;  %v3587_v52 = vcombine.low %v387_v33, %v391_v36 }
  0xa8   :  { %v3598_v55 = vcombine.high %v396_v49, %v400_v50  ;;  %v436_v33 = vld [vmem:[#allocation4 + $0x5c8] sm:$0xff] }
  0xaa   :  { %1857 = vmatpush1.bf16.msra.mxu0 %v3555_v53  ;;  %1939 = vmatpush1.bf16.msra.mxu1 %v3557_v54  ;;  %v3589_v53 = vcombine.low %v388_v37, %v392_v38  ;;  %v3596_v54 = vcombine.high %v395_v47, %v399_v48 }
  0xab   :  { %1858 = vmatprep.subr.bf16.mxu0 %v3564_v58  ;;  %1940 = vmatprep.subr.bf16.mxu1 %v3566_v62  ;;  %v404_v58 = vld [vmem:[#allocation4 + $0x4c8] sm:$0xff]  ;;  %v3604_v62 = vcombine.high %v403_v56, %v407_v57 }
  0xac   :  { %v3606_v63 = vcombine.high %v404_v58, %v408_v59 }
  0xae   :  { %1859 = vmatpush1.bf16.msra.mxu0 %v3563_v60  ;;  %1941 = vmatpush1.bf16.msra.mxu1 %v3565_v61  ;;  %v3595_v60 = vcombine.low %v395_v47, %v399_v48  ;;  %v3597_v61 = vcombine.low %v396_v49, %v400_v50  ;;  %v451_v49 = vld [vmem:[#allocation4 + $0x640] sm:$0xff] }
  0xaf   :  { %1860 = vmatprep.subr.bf16.mxu0 %v3572_v3  ;;  %1942 = vmatprep.subr.bf16.mxu1 %v3574_v7  ;;  %v412_v3 = vld [vmem:[#allocation4 + $0x508] sm:$0xff]  ;;  %v3612_v7 = vcombine.high %v411_v1, %v415_v2  ;;  %v455_v50 = vld [vmem:[#allocation4 + $0x660] sm:$0xff] }
  0xb0   :  { %v3614_v8 = vcombine.high %v412_v3, %v416_v4 }
  0xb2   :  { %1861 = vmatpush1.bf16.msra.mxu0 %v3571_v5  ;;  %1943 = vmatpush1.bf16.msra.mxu1 %v3573_v6  ;;  %v3603_v5 = vcombine.low %v403_v56, %v407_v57  ;;  %v3605_v6 = vcombine.low %v404_v58, %v408_v59  ;;  %v3652_v56 = vcombine.high %v451_v49, %v455_v50  ;;  %v459_v58 = vld [vmem:[#allocation4 + $0x680] sm:$0xff] }
  0xb3   :  { %1871 = vmatprep.subr.bf16.mxu0 %v3580_v11  ;;  %1953 = vmatprep.subr.bf16.mxu1 %v3582_v15  ;;  %v420_v11 = vld [vmem:[#allocation4 + $0x548] sm:$0xff]  ;;  %v3620_v15 = vcombine.high %v419_v9, %v423_v10  ;;  %v463_v59 = vld [vmem:[#allocation4 + $0x6a0] sm:$0xff] }
  0xb4   :  { %v3622_v16 = vcombine.high %v420_v11, %v424_v12 }
 0x147   :  { %v195_v24 = vpop.f32.mrb[0].mxu0 }
 0x148   :  { %v196_v26 = vadd.f32 %v195_v24, %v120_v22  ;;  %v197_v27 = vpop.f32.mrb[1].mxu0  ;;  %v4470_v30 = vpop.f32.mrb[0].mxu1  ;;  %v427_v22 = vld [vmem:[#allocation4 + $0x580] sm:$0xff]  ;;  %v428_v24 = vld [vmem:[#allocation4 + $0x588] sm:$0xff] }
 0x149   :  { %v198_v28 = vadd.f32 %v197_v27, %v124_v23  ;;  %v199_v29 = vpop.f32.mrb[2].mxu0  ;;  %v238_v34 = vpop.f32.mrb[1].mxu1  ;;  %v431_v23 = vld [vmem:[#allocation4 + $0x5a0] sm:$0xff]  ;;  %v3621_v27 = vcombine.low %v420_v11, %v424_v12 }
 0x14a   :  { %v243_v31 = vmax.f32 %v196_v26, 0.0  ;;  %v200_v32 = vpop.f32.mrb[3].mxu0  ;;  %v239_v39 = vadd.f32 %v238_v34, %v132_v25  ;;  %v240_v40 = vpop.f32.mrb[2].mxu1  ;;  %v432_v25 = vld [vmem:[#allocation4 + $0x5a8] sm:$0xff]  ;;  %v3619_v26 = vcombine.low %v419_v9, %v423_v10  ;;  %v475_v11 = vld [vmem:[#allocation4 + $0x700] sm:$0xff] }
 0x14b   :  { %v244_v35 = vmax.f32 %v198_v28, 0.0  ;;  %v241_v41 = vpop.f32.mrb[3].mxu1  ;;  %v3628_v28 = vcombine.high %v427_v22, %v431_v23  ;;  %v3630_v29 = vcombine.high %v428_v24, %v432_v25  ;;  %v439_v32 = vld [vmem:[#allocation4 + $0x5e0] sm:$0xff]  ;;  %v440_v34 = vld [vmem:[#allocation4 + $0x5e8] sm:$0xff]  ;;  %v3629_v36 = vcombine.low %v428_v24, %v432_v25 }
 0x14c   :  { %v246_v43 = vmax.f32 %v239_v39, 0.0  ;;  %v4474_v44 = vpack.c.bf16 %v243_v31, %v243_v31  ;;  %v435_v31 = vld [vmem:[#allocation4 + $0x5c0] sm:$0xff]  ;;  %v3638_v38 = vcombine.high %v436_v33, %v440_v34  ;;  %v444_v41 = vld [vmem:[#allocation4 + $0x608] sm:$0xff] }
 0x14d   :  { %v4472_v42 = vpack.c.bf16 %v244_v35, %v244_v35  ;;  %v3627_v35 = vcombine.low %v427_v22, %v431_v23  ;;  %v3636_v37 = vcombine.high %v435_v31, %v439_v32  ;;  %v443_v39 = vld [vmem:[#allocation4 + $0x600] sm:$0xff] }
 0x14e   :  { %v4478_v51 = vpack.c.bf16 %v246_v43, %v246_v43  ;;  %v447_v40 = vld [vmem:[#allocation4 + $0x620] sm:$0xff]  ;;  %v448_v43 = vld [vmem:[#allocation4 + $0x628] sm:$0xff] }
 0x14f   :  { %1862 = vmatprep.mubr.bf16.mxu0 %v4472_v42  ;;  %1944 = vmatprep.mubr.bf16.mxu1 %v4472_v42  ;;  %v3644_v47 = vcombine.high %v443_v39, %v447_v40  ;;  %v3646_v48 = vcombine.high %v444_v41, %v448_v43  ;;  %v479_v12 = vld [vmem:[#allocation4 + $0x720] sm:$0xff] }
 0x150   :  { %1863 = vmatmul.mubr.bf16.vlgmr.msra.gmra.mrb[4].mxu0 %v4474_v44  ;;  %1945 = vmatmul.mubr.bf16.vlgmr.msra.gmra.mrb[4].mxu1 %v4474_v44  ;;  %v3676_v22 = vcombine.high %v475_v11, %v479_v12  ;;  %v483_v24 = vld [vmem:[#allocation4 + $0x740] sm:$0xff] }
 0x151   :  { %1872 = vmatpush1.bf16.msra.mxu0 %v3579_v13  ;;  %1954 = vmatpush1.bf16.msra.mxu1 %v3581_v14  ;;  %v3611_v13 = vcombine.low %v411_v1, %v415_v2  ;;  %v3613_v14 = vcombine.low %v412_v3, %v416_v4  ;;  %v3660_v1 = vcombine.high %v459_v58, %v463_v59  ;;  %v467_v3 = vld [vmem:[#allocation4 + $0x6c0] sm:$0xff] }
 0x152   :  { %1873 = vmatprep.subr.bf16.mxu0 %v3588_v45  ;;  %1955 = vmatprep.subr.bf16.mxu1 %v3590_v46  ;;  %v3635_v45 = vcombine.low %v435_v31, %v439_v32  ;;  %v3637_v46 = vcombine.low %v436_v33, %v440_v34  ;;  %v471_v4 = vld [vmem:[#allocation4 + $0x6e0] sm:$0xff] }
 0x153   :  { %1903 = vmatprep.mubr.bf16.mxu0 %v4478_v51  ;;  %1985 = vmatprep.mubr.bf16.mxu1 %v4478_v51  ;;  %v3668_v9 = vcombine.high %v467_v3, %v471_v4  ;;  %v487_v25 = vld [vmem:[#allocation4 + $0x760] sm:$0xff] }
 0x154   :  { %v3684_v32 = vcombine.high %v483_v24, %v487_v25  ;;  %v491_v34 = vld [vmem:[#allocation4 + $0x780] sm:$0xff] }
 0x155   :  { %1874 = vmatpush1.bf16.msra.mxu0 %v3587_v52  ;;  %1956 = vmatpush1.bf16.msra.mxu1 %v3589_v53  ;;  %v452_v52 = vld [vmem:[#allocation4 + $0x648] sm:$0xff] }
 0x156   :  { %1875 = vmatprep.subr.bf16.mxu0 %v3596_v54  ;;  %1957 = vmatprep.subr.bf16.mxu1 %v3598_v55  ;;  %v456_v53 = vld [vmem:[#allocation4 + $0x668] sm:$0xff]  ;;  %v3643_v54 = vcombine.low %v443_v39, %v447_v40  ;;  %v3645_v55 = vcombine.low %v444_v41, %v448_v43  ;;  %v3683_v39 = vcombine.low %v483_v24, %v487_v25  ;;  %v282_v24 = vld [vmem:[#allocation4 + $0xf8] sm:$0xff] }
 0x157   :  { %v3654_v57 = vcombine.high %v452_v52, %v456_v53 }
 0x159   :  { %1876 = vmatpush1.bf16.msra.mxu0 %v3595_v60  ;;  %1958 = vmatpush1.bf16.msra.mxu1 %v3597_v61  ;;  %v460_v60 = vld [vmem:[#allocation4 + $0x688] sm:$0xff] }
 0x15a   :  { %1877 = vmatprep.subr.bf16.mxu0 %v3604_v62  ;;  %1959 = vmatprep.subr.bf16.mxu1 %v3606_v63  ;;  %v464_v61 = vld [vmem:[#allocation4 + $0x6a8] sm:$0xff]  ;;  %v3651_v62 = vcombine.low %v451_v49, %v455_v50  ;;  %v3653_v63 = vcombine.low %v452_v52, %v456_v53 }
 0x15b   :  { %v3662_v2 = vcombine.high %v460_v60, %v464_v61 }
 0x15d   :  { %1878 = vmatpush1.bf16.msra.mxu0 %v3603_v5  ;;  %1960 = vmatpush1.bf16.msra.mxu1 %v3605_v6  ;;  %v468_v5 = vld [vmem:[#allocation4 + $0x6c8] sm:$0xff] }
 0x15e   :  { %1879 = vmatprep.subr.bf16.mxu0 %v3612_v7  ;;  %1961 = vmatprep.subr.bf16.mxu1 %v3614_v8  ;;  %v472_v6 = vld [vmem:[#allocation4 + $0x6e8] sm:$0xff]  ;;  %v3659_v7 = vcombine.low %v459_v58, %v463_v59  ;;  %v3661_v8 = vcombine.low %v460_v60, %v464_v61 }
 0x15f   :  { %v3670_v10 = vcombine.high %v468_v5, %v472_v6 }
 0x161   :  { %1880 = vmatpush1.bf16.msra.mxu0 %v3611_v13  ;;  %1962 = vmatpush1.bf16.msra.mxu1 %v3613_v14  ;;  %v476_v13 = vld [vmem:[#allocation4 + $0x708] sm:$0xff] }
 0x162   :  { %1881 = vmatprep.subr.bf16.mxu0 %v3620_v15  ;;  %1963 = vmatprep.subr.bf16.mxu1 %v3622_v16  ;;  %v480_v14 = vld [vmem:[#allocation4 + $0x728] sm:$0xff]  ;;  %v3667_v15 = vcombine.low %v467_v3, %v471_v4  ;;  %v3669_v16 = vcombine.low %v468_v5, %v472_v6  ;;  %v266_v3 = vld [vmem:[#allocation4 + $0x78] sm:$0xff] }
 0x163   :  { %v3678_v23 = vcombine.high %v476_v13, %v480_v14  ;;  %v3677_v31 = vcombine.low %v476_v13, %v480_v14 }
 0x165   :  { %1882 = vmatpush1.bf16.msra.mxu0 %v3619_v26  ;;  %1964 = vmatpush1.bf16.msra.mxu1 %v3621_v27  ;;  %v484_v26 = vld [vmem:[#allocation4 + $0x748] sm:$0xff] }
 0x166   :  { %1883 = vmatprep.subr.bf16.mxu0 %v3628_v28  ;;  %1965 = vmatprep.subr.bf16.mxu1 %v3630_v29  ;;  %v488_v27 = vld [vmem:[#allocation4 + $0x768] sm:$0xff]  ;;  %v127_v28 = vsub.s32 2, %v4452_v17  ;;  %v3675_v29 = vcombine.low %v475_v11, %v479_v12  ;;  %v274_v11 = vld [vmem:[#allocation4 + $0xb8] sm:$0xff] }
 0x167   :  { %v3686_v33 = vcombine.high %v484_v26, %v488_v27  ;;  %v3685_v40 = vcombine.low %v484_v26, %v488_v27 }
 0x169   :  { %1884 = vmatpush1.bf16.msra.mxu0 %v3627_v35  ;;  %1966 = vmatpush1.bf16.msra.mxu1 %v3629_v36  ;;  %v495_v35 = vld [vmem:[#allocation4 + $0x7a0] sm:$0xff]  ;;  %v492_v36 = vld [vmem:[#allocation4 + $0x788] sm:$0xff] }
 0x16a   :  { %1885 = vmatprep.subr.bf16.mxu0 %v3636_v37  ;;  %1967 = vmatprep.subr.bf16.mxu1 %v3638_v38  ;;  %v496_v37 = vld [vmem:[#allocation4 + $0x7a8] sm:$0xff]  ;;  %v128_v38 = vrot.slane %v4457_v19, %v127_v28  ;;  %v3692_v41 = vcombine.high %v491_v34, %v495_v35  ;;  %v3691_v50 = vcombine.low %v491_v34, %v495_v35 }
 0x16b   :  { %v3694_v43 = vcombine.high %v492_v36, %v496_v37  ;;  %v3693_v52 = vcombine.low %v492_v36, %v496_v37 }
 0x16c   :  { %v237_v49 = vadd.f32 %v4470_v30, %v128_v38  ;;  %v293_v38 = vld [vmem:[#allocation4 + $0x150] sm:$0xff] }
 0x16d   :  { %1886 = vmatpush1.bf16.msra.mxu0 %v3635_v45  ;;  %1968 = vmatpush1.bf16.msra.mxu1 %v3637_v46  ;;  %v499_v45 = vld [vmem:[#allocation4 + $0x7c0] sm:$0xff] }
 0x16e   :  { %1887 = vmatprep.subr.bf16.mxu0 %v3644_v47  ;;  %1969 = vmatprep.subr.bf16.mxu1 %v3646_v48  ;;  %v503_v46 = vld [vmem:[#allocation4 + $0x7e0] sm:$0xff]  ;;  %v500_v47 = vld [vmem:[#allocation4 + $0x7c8] sm:$0xff]  ;;  %v245_v58 = vmax.f32 %v237_v49, 0.0  ;;  %v305_v49 = vld [vmem:[#allocation4 + $0x1b0] sm:$0xff] }
 0x16f   :  { %v504_v48 = vld [vmem:[#allocation4 + $0x7e8] sm:$0xff]  ;;  %v3700_v19 = vcombine.high %v499_v45, %v503_v46  ;;  %v3699_v59 = vcombine.low %v499_v45, %v503_v46 }
 0x170   :  { %v3702_v53 = vcombine.high %v500_v47, %v504_v48  ;;  %v3701_v60 = vcombine.low %v500_v47, %v504_v48  ;;  %v301_v48 = vld [vmem:[#allocation4 + $0x190] sm:$0xff] }
 0x171   :  { %1888 = vmatpush1.bf16.msra.mxu0 %v3643_v54  ;;  %1970 = vmatpush1.bf16.msra.mxu1 %v3645_v55  ;;  %v253_v54 = vld [vmem:[#allocation4 + $0x10] sm:$0xff] }
 0x172   :  { %1889 = vmatprep.subr.bf16.mxu0 %v3652_v56  ;;  %1971 = vmatprep.subr.bf16.mxu1 %v3654_v57  ;;  %v257_v55 = vld [vmem:[#allocation4 + $0x30] sm:$0xff]  ;;  %v254_v56 = vld [vmem:[#allocation4 + $0x18] sm:$0xff] }
 0x173   :  { %v258_v57 = vld [vmem:[#allocation4 + $0x38] sm:$0xff]  ;;  %v3456_v30 = vcombine.high %v253_v54, %v257_v55  ;;  %v3455_v4 = vcombine.low %v253_v54, %v257_v55  ;;  %v3504_v54 = vcombine.high %v301_v48, %v305_v49 }
 0x174   :  { %v3458_v61 = vcombine.high %v254_v56, %v258_v57  ;;  %v3457_v5 = vcombine.low %v254_v56, %v258_v57  ;;  %v309_v56 = vld [vmem:[#allocation4 + $0x1d0] sm:$0xff] }
 0x175   :  { %1890 = vmatpush1.bf16.msra.mxu0 %v3651_v62  ;;  %1972 = vmatpush1.bf16.msra.mxu1 %v3653_v63  ;;  %v261_v62 = vld [vmem:[#allocation4 + $0x50] sm:$0xff]  ;;  %v4489_v63 = vpack.c.bf16 %v245_v58, %v245_v58  ;;  %v310_v58 = vld [vmem:[#allocation4 + $0x1d8] sm:$0xff] }
 0x176   :  { %1891 = vmatprep.subr.bf16.mxu0 %v3660_v1  ;;  %1973 = vmatprep.subr.bf16.mxu1 %v3662_v2  ;;  %v265_v1 = vld [vmem:[#allocation4 + $0x70] sm:$0xff]  ;;  %v262_v2 = vld [vmem:[#allocation4 + $0x58] sm:$0xff] }
 0x177   :  { %v3464_v6 = vcombine.high %v261_v62, %v265_v1  ;;  %v3463_v12 = vcombine.low %v261_v62, %v265_v1  ;;  %v3465_v13 = vcombine.low %v262_v2, %v266_v3  ;;  %v313_v57 = vld [vmem:[#allocation4 + $0x1f0] sm:$0xff] }
 0x178   :  { %v317_v1 = vld [vmem:[#allocation4 + $0x210] sm:$0xff] }
 0x179   :  { %1892 = vmatpush1.bf16.msra.mxu0 %v3659_v7  ;;  %1974 = vmatpush1.bf16.msra.mxu1 %v3661_v8  ;;  %v3466_v7 = vcombine.high %v262_v2, %v266_v3  ;;  %v269_v8 = vld [vmem:[#allocation4 + $0x90] sm:$0xff]  ;;  %v318_v3 = vld [vmem:[#allocation4 + $0x218] sm:$0xff] }
 0x17a   :  { %1893 = vmatprep.subr.bf16.mxu0 %v3668_v9  ;;  %1975 = vmatprep.subr.bf16.mxu1 %v3670_v10  ;;  %v273_v9 = vld [vmem:[#allocation4 + $0xb0] sm:$0xff]  ;;  %v270_v10 = vld [vmem:[#allocation4 + $0x98] sm:$0xff] }
 0x17b   :  { %v3472_v14 = vcombine.high %v269_v8, %v273_v9  ;;  %v3471_v25 = vcombine.low %v269_v8, %v273_v9  ;;  %v3473_v26 = vcombine.low %v270_v10, %v274_v11  ;;  %v321_v2 = vld [vmem:[#allocation4 + $0x230] sm:$0xff] }
 0x17c   :  { %v325_v9 = vld [vmem:[#allocation4 + $0x250] sm:$0xff] }
 0x17d   :  { %1894 = vmatpush1.bf16.msra.mxu0 %v3667_v15  ;;  %1976 = vmatpush1.bf16.msra.mxu1 %v3669_v16  ;;  %v3474_v15 = vcombine.high %v270_v10, %v274_v11  ;;  %v277_v16 = vld [vmem:[#allocation4 + $0xd0] sm:$0xff]  ;;  %v326_v11 = vld [vmem:[#allocation4 + $0x258] sm:$0xff] }
 0x17e   :  { %1895 = vmatprep.subr.bf16.mxu0 %v3676_v22  ;;  %1977 = vmatprep.subr.bf16.mxu1 %v3678_v23  ;;  %v281_v22 = vld [vmem:[#allocation4 + $0xf0] sm:$0xff]  ;;  %v278_v23 = vld [vmem:[#allocation4 + $0xd8] sm:$0xff] }
 0x17f   :  { %v3480_v27 = vcombine.high %v277_v16, %v281_v22  ;;  %v3479_v34 = vcombine.low %v277_v16, %v281_v22  ;;  %v3481_v35 = vcombine.low %v278_v23, %v282_v24  ;;  %v329_v10 = vld [vmem:[#allocation4 + $0x270] sm:$0xff] }
 0x180   :  { %v333_v22 = vld [vmem:[#allocation4 + $0x290] sm:$0xff] }
 0x181   :  { %1896 = vmatpush1.bf16.msra.mxu0 %v3675_v29  ;;  %1978 = vmatpush1.bf16.msra.mxu1 %v3677_v31  ;;  %v3482_v29 = vcombine.high %v278_v23, %v282_v24  ;;  %v285_v31 = vld [vmem:[#allocation4 + $0x110] sm:$0xff]  ;;  %v334_v24 = vld [vmem:[#allocation4 + $0x298] sm:$0xff] }
 0x182   :  { %1897 = vmatprep.subr.bf16.mxu0 %v3684_v32  ;;  %1979 = vmatprep.subr.bf16.mxu1 %v3686_v33  ;;  %v289_v32 = vld [vmem:[#allocation4 + $0x130] sm:$0xff]  ;;  %v290_v33 = vld [vmem:[#allocation4 + $0x138] sm:$0xff] }
 0x183   :  { %v3488_v36 = vcombine.high %v285_v31, %v289_v32  ;;  %v337_v23 = vld [vmem:[#allocation4 + $0x2b0] sm:$0xff] }
 0x185   :  { %1898 = vmatpush1.bf16.msra.mxu0 %v3683_v39  ;;  %1980 = vmatpush1.bf16.msra.mxu1 %v3685_v40  ;;  %v297_v39 = vld [vmem:[#allocation4 + $0x170] sm:$0xff]  ;;  %v294_v40 = vld [vmem:[#allocation4 + $0x158] sm:$0xff] }
 0x186   :  { %1899 = vmatprep.subr.bf16.mxu0 %v3692_v41  ;;  %1981 = vmatprep.subr.bf16.mxu1 %v3694_v43  ;;  %v298_v41 = vld [vmem:[#allocation4 + $0x178] sm:$0xff]  ;;  %v3487_v43 = vcombine.low %v285_v31, %v289_v32  ;;  %v3496_v46 = vcombine.high %v293_v38, %v297_v39  ;;  %v341_v32 = vld [vmem:[#allocation4 + $0x2d0] sm:$0xff] }
 0x187   :  { %v3498_v47 = vcombine.high %v294_v40, %v298_v41 }
 0x189   :  { %1900 = vmatpush1.bf16.msra.mxu0 %v3691_v50  ;;  %1982 = vmatpush1.bf16.msra.mxu1 %v3693_v52  ;;  %v302_v50 = vld [vmem:[#allocation4 + $0x198] sm:$0xff] }
 0x18a   :  { %1901 = vmatprep.subr.bf16.mxu0 %v3700_v19  ;;  %1983 = vmatprep.subr.bf16.mxu1 %v3702_v53  ;;  %v306_v52 = vld [vmem:[#allocation4 + $0x1b8] sm:$0xff]  ;;  %v3495_v19 = vcombine.low %v293_v38, %v297_v39  ;;  %v3497_v53 = vcombine.low %v294_v40, %v298_v41  ;;  %v349_v39 = vld [vmem:[#allocation4 + $0x310] sm:$0xff] }
 0x18b   :  { %v3506_v55 = vcombine.high %v302_v50, %v306_v52  ;;  %v353_v40 = vld [vmem:[#allocation4 + $0x330] sm:$0xff]  ;;  %v350_v41 = vld [vmem:[#allocation4 + $0x318] sm:$0xff] }
 0x18d   :  { %1902 = vmatpush1.bf16.msra.mxu0 %v3699_v59  ;;  %1984 = vmatpush1.bf16.msra.mxu1 %v3701_v60  ;;  %v314_v59 = vld [vmem:[#allocation4 + $0x1f8] sm:$0xff]  ;;  %v3503_v60 = vcombine.low %v301_v48, %v305_v49  ;;  %v357_v49 = vld [vmem:[#allocation4 + $0x350] sm:$0xff] }
 0x18e   :  { %1994 = vmatprep.subr.bf16.mxu0 %v3456_v30  ;;  %2076 = vmatprep.subr.bf16.mxu1 %v3458_v61  ;;  %v3505_v30 = vcombine.low %v302_v50, %v306_v52  ;;  %v3512_v61 = vcombine.high %v309_v56, %v313_v57  ;;  %v3514_v62 = vcombine.high %v310_v58, %v314_v59  ;;  %v361_v50 = vld [vmem:[#allocation4 + $0x370] sm:$0xff]  ;;  %v358_v52 = vld [vmem:[#allocation4 + $0x358] sm:$0xff] }
 0x190   :  { %1904 = vmatmul.mubr.bf16.vlgmr.msra.gmra.mrb[4].mxu0 %v4489_v63  ;;  %1986 = vmatmul.mubr.bf16.vlgmr.msra.gmra.mrb[4].mxu1 %v4489_v63 }
 0x191   :  { %1995 = vmatpush1.bf16.msra.mxu0 %v3455_v4  ;;  %2026 = vmatprep.mubr.bf16.mxu0 %v4472_v42  ;;  %v322_v4 = vld [vmem:[#allocation4 + $0x238] sm:$0xff] }
 0x192   :  { %2077 = vmatpush1.bf16.msra.mxu1 %v3457_v5  ;;  %2108 = vmatprep.mubr.bf16.mxu1 %v4472_v42  ;;  %v286_v42 = vld [vmem:[#allocation4 + $0x118] sm:$0xff]  ;;  %v3511_v5 = vcombine.low %v309_v56, %v313_v57  ;;  %v3522_v8 = vcombine.high %v318_v3, %v322_v4  ;;  %v365_v57 = vld [vmem:[#allocation4 + $0x390] sm:$0xff] }
 0x193   :  { %1996 = vmatprep.subr.bf16.mxu0 %v3464_v6  ;;  %2078 = vmatprep.subr.bf16.mxu1 %v3466_v7  ;;  %v3490_v37 = vcombine.high %v286_v42, %v290_v33  ;;  %v3489_v45 = vcombine.low %v286_v42, %v290_v33  ;;  %v3513_v6 = vcombine.low %v310_v58, %v314_v59  ;;  %v345_v42 = vld [vmem:[#allocation4 + $0x2f0] sm:$0xff]  ;;  %v342_v33 = vld [vmem:[#allocation4 + $0x2d8] sm:$0xff] }
 0x194   :  { %v3520_v7 = vcombine.high %v317_v1, %v321_v2  ;;  %v369_v58 = vld [vmem:[#allocation4 + $0x3b0] sm:$0xff]  ;;  %v366_v59 = vld [vmem:[#allocation4 + $0x398] sm:$0xff] }
 0x195   :  { %1997 = vmatpush1.bf16.msra.mxu0 %v3463_v12  ;;  %v330_v12 = vld [vmem:[#allocation4 + $0x278] sm:$0xff] }
 0x196   :  { %2079 = vmatpush1.bf16.msra.mxu1 %v3465_v13  ;;  %1998 = vmatprep.subr.bf16.mxu0 %v3472_v14  ;;  %v3519_v13 = vcombine.low %v317_v1, %v321_v2  ;;  %v3521_v14 = vcombine.low %v318_v3, %v322_v4  ;;  %v3530_v16 = vcombine.high %v326_v11, %v330_v12  ;;  %v373_v2 = vld [vmem:[#allocation4 + $0x3d0] sm:$0xff]  ;;  %v374_v4 = vld [vmem:[#allocation4 + $0x3d8] sm:$0xff] }
 0x197   :  { %2080 = vmatprep.subr.bf16.mxu1 %v3474_v15  ;;  %v3528_v15 = vcombine.high %v325_v9, %v329_v10  ;;  %v377_v3 = vld [vmem:[#allocation4 + $0x3f0] sm:$0xff] }
 0x199   :  { %1999 = vmatpush1.bf16.msra.mxu0 %v3471_v25  ;;  %v338_v25 = vld [vmem:[#allocation4 + $0x2b8] sm:$0xff] }
 0x19a   :  { %2081 = vmatpush1.bf16.msra.mxu1 %v3473_v26  ;;  %2000 = vmatprep.subr.bf16.mxu0 %v3480_v27  ;;  %v3527_v26 = vcombine.low %v325_v9, %v329_v10  ;;  %v3529_v27 = vcombine.low %v326_v11, %v330_v12  ;;  %v3538_v31 = vcombine.high %v334_v24, %v338_v25  ;;  %v381_v10 = vld [vmem:[#allocation4 + $0x410] sm:$0xff]  ;;  %v382_v12 = vld [vmem:[#allocation4 + $0x418] sm:$0xff] }
 0x19b   :  { %2082 = vmatprep.subr.bf16.mxu1 %v3482_v29  ;;  %v3536_v29 = vcombine.high %v333_v22, %v337_v23  ;;  %v385_v11 = vld [vmem:[#allocation4 + $0x430] sm:$0xff] }
 0x19d   :  { %2001 = vmatpush1.bf16.msra.mxu0 %v3479_v34  ;;  %v346_v34 = vld [vmem:[#allocation4 + $0x2f8] sm:$0xff] }
 0x19e   :  { %2083 = vmatpush1.bf16.msra.mxu1 %v3481_v35  ;;  %2002 = vmatprep.subr.bf16.mxu0 %v3488_v36  ;;  %v3535_v35 = vcombine.low %v333_v22, %v337_v23  ;;  %v3537_v36 = vcombine.low %v334_v24, %v338_v25  ;;  %v3546_v38 = vcombine.high %v342_v33, %v346_v34  ;;  %v389_v23 = vld [vmem:[#allocation4 + $0x450] sm:$0xff] }
 0x19f   :  { %2084 = vmatprep.subr.bf16.mxu1 %v3490_v37  ;;  %v3544_v37 = vcombine.high %v341_v32, %v345_v42  ;;  %v393_v24 = vld [vmem:[#allocation4 + $0x470] sm:$0xff]  ;;  %v3583_v25 = vcombine.low %v381_v10, %v385_v11 }
 0x1a1   :  { %2003 = vmatpush1.bf16.msra.mxu0 %v3487_v43  ;;  %v354_v43 = vld [vmem:[#allocation4 + $0x338] sm:$0xff] }
 0x1a2   :  { %2085 = vmatpush1.bf16.msra.mxu1 %v3489_v45  ;;  %2004 = vmatprep.subr.bf16.mxu0 %v3496_v46  ;;  %v3543_v45 = vcombine.low %v341_v32, %v345_v42  ;;  %v3545_v46 = vcombine.low %v342_v33, %v346_v34  ;;  %v3554_v48 = vcombine.high %v350_v41, %v354_v43  ;;  %v397_v32 = vld [vmem:[#allocation4 + $0x490] sm:$0xff]  ;;  %v398_v34 = vld [vmem:[#allocation4 + $0x498] sm:$0xff] }
 0x1a3   :  { %2086 = vmatprep.subr.bf16.mxu1 %v3498_v47  ;;  %v3552_v47 = vcombine.high %v349_v39, %v353_v40  ;;  %v401_v42 = vld [vmem:[#allocation4 + $0x4b0] sm:$0xff] }
 0x1a5   :  { %2005 = vmatpush1.bf16.msra.mxu0 %v3495_v19  ;;  %v362_v19 = vld [vmem:[#allocation4 + $0x378] sm:$0xff] }
 0x1a6   :  { %2087 = vmatpush1.bf16.msra.mxu1 %v3497_v53  ;;  %2006 = vmatprep.subr.bf16.mxu0 %v3504_v54  ;;  %v3551_v53 = vcombine.low %v349_v39, %v353_v40  ;;  %v3553_v54 = vcombine.low %v350_v41, %v354_v43  ;;  %v3562_v56 = vcombine.high %v358_v52, %v362_v19  ;;  %v405_v40 = vld [vmem:[#allocation4 + $0x4d0] sm:$0xff]  ;;  %v406_v43 = vld [vmem:[#allocation4 + $0x4d8] sm:$0xff] }
 0x1a7   :  { %2088 = vmatprep.subr.bf16.mxu1 %v3506_v55  ;;  %v3560_v55 = vcombine.high %v357_v49, %v361_v50  ;;  %v409_v41 = vld [vmem:[#allocation4 + $0x4f0] sm:$0xff] }
 0x1a9   :  { %2007 = vmatpush1.bf16.msra.mxu0 %v3503_v60  ;;  %v370_v60 = vld [vmem:[#allocation4 + $0x3b8] sm:$0xff] }
 0x1aa   :  { %2089 = vmatpush1.bf16.msra.mxu1 %v3505_v30  ;;  %2008 = vmatprep.subr.bf16.mxu0 %v3512_v61  ;;  %v3559_v30 = vcombine.low %v357_v49, %v361_v50  ;;  %v3561_v61 = vcombine.low %v358_v52, %v362_v19  ;;  %v3570_v1 = vcombine.high %v366_v59, %v370_v60  ;;  %v413_v49 = vld [vmem:[#allocation4 + $0x510] sm:$0xff]  ;;  %v414_v52 = vld [vmem:[#allocation4 + $0x518] sm:$0xff] }
 0x1ab   :  { %2090 = vmatprep.subr.bf16.mxu1 %v3514_v62  ;;  %v3568_v62 = vcombine.high %v365_v57, %v369_v58  ;;  %v417_v50 = vld [vmem:[#allocation4 + $0x530] sm:$0xff]  ;;  %v418_v19 = vld [vmem:[#allocation4 + $0x538] sm:$0xff] }
 0x1ad   :  { %2009 = vmatpush1.bf16.msra.mxu0 %v3511_v5  ;;  %v378_v5 = vld [vmem:[#allocation4 + $0x3f8] sm:$0xff] }
 0x1ae   :  { %2091 = vmatpush1.bf16.msra.mxu1 %v3513_v6  ;;  %2010 = vmatprep.subr.bf16.mxu0 %v3520_v7  ;;  %v3567_v6 = vcombine.low %v365_v57, %v369_v58  ;;  %v3569_v7 = vcombine.low %v366_v59, %v370_v60  ;;  %v3578_v9 = vcombine.high %v374_v4, %v378_v5  ;;  %v425_v57 = vld [vmem:[#allocation4 + $0x570] sm:$0xff]  ;;  %v422_v58 = vld [vmem:[#allocation4 + $0x558] sm:$0xff] }
 0x1af   :  { %2092 = vmatprep.subr.bf16.mxu1 %v3522_v8  ;;  %v3576_v8 = vcombine.high %v373_v2, %v377_v3  ;;  %v426_v59 = vld [vmem:[#allocation4 + $0x578] sm:$0xff]  ;;  %v3615_v60 = vcombine.low %v413_v49, %v417_v50 }
 0x1b1   :  { %2011 = vmatpush1.bf16.msra.mxu0 %v3519_v13  ;;  %v386_v13 = vld [vmem:[#allocation4 + $0x438] sm:$0xff] }
 0x1b2   :  { %2093 = vmatpush1.bf16.msra.mxu1 %v3521_v14  ;;  %2012 = vmatprep.subr.bf16.mxu0 %v3528_v15  ;;  %v3575_v14 = vcombine.low %v373_v2, %v377_v3  ;;  %v3577_v15 = vcombine.low %v374_v4, %v378_v5  ;;  %v3586_v22 = vcombine.high %v382_v12, %v386_v13  ;;  %v433_v2 = vld [vmem:[#allocation4 + $0x5b0] sm:$0xff]  ;;  %v430_v3 = vld [vmem:[#allocation4 + $0x598] sm:$0xff] }
 0x1b3   :  { %2094 = vmatprep.subr.bf16.mxu1 %v3530_v16  ;;  %v3584_v16 = vcombine.high %v381_v10, %v385_v11  ;;  %v434_v4 = vld [vmem:[#allocation4 + $0x5b8] sm:$0xff]  ;;  %v441_v10 = vld [vmem:[#allocation4 + $0x5f0] sm:$0xff] }
 0x1b4   :  { %v438_v11 = vld [vmem:[#allocation4 + $0x5d8] sm:$0xff] }
 0x1b5   :  { %2013 = vmatpush1.bf16.msra.mxu0 %v3527_v26  ;;  %v390_v26 = vld [vmem:[#allocation4 + $0x458] sm:$0xff] }
 0x1b6   :  { %2095 = vmatpush1.bf16.msra.mxu1 %v3529_v27  ;;  %2014 = vmatprep.subr.bf16.mxu0 %v3536_v29  ;;  %v394_v27 = vld [vmem:[#allocation4 + $0x478] sm:$0xff]  ;;  %v3585_v29 = vcombine.low %v382_v12, %v386_v13 }
 0x1b7   :  { %2096 = vmatprep.subr.bf16.mxu1 %v3538_v31  ;;  %v3592_v31 = vcombine.high %v389_v23, %v393_v24  ;;  %v3594_v33 = vcombine.high %v390_v26, %v394_v27  ;;  %v442_v12 = vld [vmem:[#allocation4 + $0x5f8] sm:$0xff] }
 0x1b9   :  { %2015 = vmatpush1.bf16.msra.mxu0 %v3535_v35  ;;  %v402_v35 = vld [vmem:[#allocation4 + $0x4b8] sm:$0xff] }
 0x1ba   :  { %2097 = vmatpush1.bf16.msra.mxu1 %v3537_v36  ;;  %2016 = vmatprep.subr.bf16.mxu0 %v3544_v37  ;;  %v3591_v36 = vcombine.low %v389_v23, %v393_v24  ;;  %v3593_v37 = vcombine.low %v390_v26, %v394_v27  ;;  %v3602_v39 = vcombine.high %v398_v34, %v402_v35  ;;  %v449_v23 = vld [vmem:[#allocation4 + $0x630] sm:$0xff]  ;;  %v446_v24 = vld [vmem:[#allocation4 + $0x618] sm:$0xff] }
 0x1bb   :  { %2098 = vmatprep.subr.bf16.mxu1 %v3546_v38  ;;  %v3600_v38 = vcombine.high %v397_v32, %v401_v42  ;;  %v3641_v27 = vcombine.low %v438_v11, %v442_v12 }
 0x1bd   :  { %2017 = vmatpush1.bf16.msra.mxu0 %v3543_v45  ;;  %v410_v45 = vld [vmem:[#allocation4 + $0x4f8] sm:$0xff] }
 0x1be   :  { %2099 = vmatpush1.bf16.msra.mxu1 %v3545_v46  ;;  %2018 = vmatprep.subr.bf16.mxu0 %v3552_v47  ;;  %v3599_v46 = vcombine.low %v397_v32, %v401_v42  ;;  %v3608_v47 = vcombine.high %v405_v40, %v409_v41  ;;  %v453_v32 = vld [vmem:[#allocation4 + $0x650] sm:$0xff] }
 0x1bf   :  { %2100 = vmatprep.subr.bf16.mxu1 %v3554_v48  ;;  %v3610_v48 = vcombine.high %v406_v43, %v410_v45  ;;  %v457_v42 = vld [vmem:[#allocation4 + $0x670] sm:$0xff] }
 0x1c1   :  { %2019 = vmatpush1.bf16.msra.mxu0 %v3551_v53  ;;  %v3609_v53 = vcombine.low %v406_v43, %v410_v45  ;;  %v466_v43 = vld [vmem:[#allocation4 + $0x6b8] sm:$0xff]  ;;  %v3655_v45 = vcombine.low %v453_v32, %v457_v42 }
 0x1c2   :  { %2101 = vmatpush1.bf16.msra.mxu1 %v3553_v54  ;;  %2020 = vmatprep.subr.bf16.mxu0 %v3560_v55  ;;  %v3616_v54 = vcombine.high %v413_v49, %v417_v50  ;;  %v3618_v55 = vcombine.high %v414_v52, %v418_v19  ;;  %v473_v49 = vld [vmem:[#allocation4 + $0x6f0] sm:$0xff]  ;;  %v470_v50 = vld [vmem:[#allocation4 + $0x6d8] sm:$0xff] }
 0x1c3   :  { %2102 = vmatprep.subr.bf16.mxu1 %v3562_v56  ;;  %v421_v56 = vld [vmem:[#allocation4 + $0x550] sm:$0xff] }
 0x1c4   :  { %v3623_v5 = vcombine.low %v421_v56, %v425_v57 }
 0x1c5   :  { %2021 = vmatpush1.bf16.msra.mxu0 %v3559_v30  ;;  %v3617_v30 = vcombine.low %v414_v52, %v418_v19  ;;  %v474_v52 = vld [vmem:[#allocation4 + $0x6f8] sm:$0xff] }
 0x1c6   :  { %2103 = vmatpush1.bf16.msra.mxu1 %v3561_v61  ;;  %2022 = vmatprep.subr.bf16.mxu0 %v3568_v62  ;;  %v3624_v61 = vcombine.high %v421_v56, %v425_v57  ;;  %v3626_v62 = vcombine.high %v422_v58, %v426_v59  ;;  %v481_v56 = vld [vmem:[#allocation4 + $0x730] sm:$0xff]  ;;  %v478_v57 = vld [vmem:[#allocation4 + $0x718] sm:$0xff] }
 0x1c7   :  { %2104 = vmatprep.subr.bf16.mxu1 %v3570_v1  ;;  %v429_v1 = vld [vmem:[#allocation4 + $0x590] sm:$0xff] }
 0x1c8   :  { %v3631_v13 = vcombine.low %v429_v1, %v433_v2 }
 0x1c9   :  { %2023 = vmatpush1.bf16.msra.mxu0 %v3567_v6  ;;  %v3625_v6 = vcombine.low %v422_v58, %v426_v59  ;;  %v482_v58 = vld [vmem:[#allocation4 + $0x738] sm:$0xff] }
 0x1ca   :  { %2105 = vmatpush1.bf16.msra.mxu1 %v3569_v7  ;;  %2024 = vmatprep.subr.bf16.mxu0 %v3576_v8  ;;  %v3632_v7 = vcombine.high %v429_v1, %v433_v2  ;;  %v3634_v8 = vcombine.high %v430_v3, %v434_v4  ;;  %v489_v1 = vld [vmem:[#allocation4 + $0x770] sm:$0xff]  ;;  %v486_v2 = vld [vmem:[#allocation4 + $0x758] sm:$0xff] }
 0x1cb   :  { %2106 = vmatprep.subr.bf16.mxu1 %v3578_v9  ;;  %v437_v9 = vld [vmem:[#allocation4 + $0x5d0] sm:$0xff] }
 0x1cc   :  { %v3639_v26 = vcombine.low %v437_v9, %v441_v10 }
 0x1cd   :  { %2025 = vmatpush1.bf16.msra.mxu0 %v3575_v14  ;;  %v3633_v14 = vcombine.low %v430_v3, %v434_v4  ;;  %v490_v3 = vld [vmem:[#allocation4 + $0x778] sm:$0xff] }
 0x1ce   :  { %2107 = vmatpush1.bf16.msra.mxu1 %v3577_v15  ;;  %2035 = vmatprep.subr.bf16.mxu0 %v3584_v16  ;;  %v3640_v15 = vcombine.high %v437_v9, %v441_v10  ;;  %v3642_v16 = vcombine.high %v438_v11, %v442_v12  ;;  %v497_v9 = vld [vmem:[#allocation4 + $0x7b0] sm:$0xff]  ;;  %v494_v10 = vld [vmem:[#allocation4 + $0x798] sm:$0xff] }
 0x1cf   :  { %2117 = vmatprep.subr.bf16.mxu1 %v3586_v22  ;;  %v445_v22 = vld [vmem:[#allocation4 + $0x610] sm:$0xff]  ;;  %v498_v11 = vld [vmem:[#allocation4 + $0x7b8] sm:$0xff] }
 0x1d0   :  { %2027 = vmatmul.mubr.bf16.vlgmr.msra.gmra.mrb[8].mxu0 %v4474_v44 }
 0x1d1   :  { %2109 = vmatmul.mubr.bf16.vlgmr.msra.gmra.mrb[8].mxu1 %v4474_v44  ;;  %2036 = vmatpush1.bf16.msra.mxu0 %v3583_v25  ;;  %v3601_v44 = vcombine.low %v398_v34, %v402_v35  ;;  %v450_v25 = vld [vmem:[#allocation4 + $0x638] sm:$0xff]  ;;  %v3647_v35 = vcombine.low %v445_v22, %v449_v23 }
 0x1d2   :  { %2067 = vmatprep.mubr.bf16.mxu0 %v4478_v51  ;;  %2118 = vmatpush1.bf16.msra.mxu1 %v3585_v29  ;;  %v3648_v29 = vcombine.high %v445_v22, %v449_v23  ;;  %v458_v34 = vld [vmem:[#allocation4 + $0x678] sm:$0xff]  ;;  %v505_v22 = vld [vmem:[#allocation4 + $0x7f0] sm:$0xff] }
 0x1d3   :  { %2149 = vmatprep.mubr.bf16.mxu1 %v4478_v51  ;;  %2037 = vmatprep.subr.bf16.mxu0 %v3592_v31  ;;  %v3607_v51 = vcombine.low %v405_v40, %v409_v41  ;;  %v3650_v31 = vcombine.high %v446_v24, %v450_v25  ;;  %v465_v40 = vld [vmem:[#allocation4 + $0x6b0] sm:$0xff]  ;;  %v462_v41 = vld [vmem:[#allocation4 + $0x698] sm:$0xff] }
 0x1d4   :  { %2119 = vmatprep.subr.bf16.mxu1 %v3594_v33  ;;  %v454_v33 = vld [vmem:[#allocation4 + $0x658] sm:$0xff] }
 0x1d5   :  { %2038 = vmatpush1.bf16.msra.mxu0 %v3591_v36  ;;  %v3649_v36 = vcombine.low %v446_v24, %v450_v25  ;;  %v502_v23 = vld [vmem:[#allocation4 + $0x7d8] sm:$0xff] }
 0x1d6   :  { %2120 = vmatpush1.bf16.msra.mxu1 %v3593_v37  ;;  %2039 = vmatprep.subr.bf16.mxu0 %v3600_v38  ;;  %v3656_v37 = vcombine.high %v453_v32, %v457_v42  ;;  %v3658_v38 = vcombine.high %v454_v33, %v458_v34  ;;  %v506_v24 = vld [vmem:[#allocation4 + $0x7f8] sm:$0xff]  ;;  %v3937_v42 = vld [vmem:[#allocation7 + $0x4] ss:$8 sps:$4 sm:$0xff]  }
 0x1d7   :  { %2121 = vmatprep.subr.bf16.mxu1 %v3602_v39  ;;  %v461_v39 = vld [vmem:[#allocation4 + $0x690] sm:$0xff]  ;;  %v3705_v32 = vcombine.low %v502_v23, %v506_v24 }
 0x1d8   :  { %v3663_v19 = vcombine.low %v461_v39, %v465_v40 }
 0x1d9   :  { %2040 = vmatpush1.bf16.msra.mxu0 %v3599_v46  ;;  %v3657_v46 = vcombine.low %v454_v33, %v458_v34  ;;  %v3961_v33 = vld [vmem:[#allocation6 + $0x4] ss:$8 sps:$4 sm:$0xff]   ;;  %v3935_v34 = vld [vmem:[#allocation7] ss:$8 sps:$4 sm:$0xff]  }
 0x1da   :  { %2122 = vmatpush1.bf16.msra.mxu1 %v3601_v44  ;;  %2041 = vmatprep.subr.bf16.mxu0 %v3608_v47  ;;  %v3664_v44 = vcombine.high %v461_v39, %v465_v40  ;;  %v3666_v47 = vcombine.high %v462_v41, %v466_v43  ;;  %v3943_v39 = vld [vmem:[#allocation7 + $0x24] ss:$8 sps:$4 sm:$0xff]   ;;  %v3962_v40 = vld [vmem:[#allocation6 + $0x10] ss:$8 sps:$4 sm:$0xff]  }
 0x1db   :  { %2123 = vmatprep.subr.bf16.mxu1 %v3610_v48  ;;  %v469_v48 = vld [vmem:[#allocation4 + $0x6d0] sm:$0xff] }
 0x1dc   :  { %v3671_v59 = vcombine.low %v469_v48, %v473_v49 }
 0x1dd   :  { %2042 = vmatpush1.bf16.msra.mxu0 %v3607_v51  ;;  %v3665_v51 = vcombine.low %v462_v41, %v466_v43  ;;  %v3970_v41 = vld [vmem:[#allocation6 + $0x24] ss:$8 sps:$4 sm:$0xff]   ;;  %v3941_v43 = vld [vmem:[#allocation7 + $0x20] ss:$8 sps:$4 sm:$0xff]  }
 0x1de   :  { %2124 = vmatpush1.bf16.msra.mxu1 %v3609_v53  ;;  %2043 = vmatprep.subr.bf16.mxu0 %v3616_v54  ;;  %v3672_v53 = vcombine.high %v469_v48, %v473_v49  ;;  %v3674_v54 = vcombine.high %v470_v50, %v474_v52  ;;  %v3974_v48 = vld [vmem:[#allocation6 + $0x30] ss:$8 sps:$4 sm:$0xff]   ;;  %v3982_v49 = vld [vmem:[#allocation6 + $0x44] ss:$8 sps:$4 sm:$0xff]  }
 0x1df   :  { %2125 = vmatprep.subr.bf16.mxu1 %v3618_v55  ;;  %v477_v55 = vld [vmem:[#allocation4 + $0x710] sm:$0xff] }
 0x1e0   :  { %v3679_v4 = vcombine.low %v477_v55, %v481_v56 }
 0x1e1   :  { %2044 = vmatpush1.bf16.msra.mxu0 %v3615_v60  ;;  %v3673_v60 = vcombine.low %v470_v50, %v474_v52  ;;  %v3952_v50 = vld [vmem:[#allocation7 + $0x54] ss:$8 sps:$4 sm:$0xff]   ;;  %v3980_v52 = vld [vmem:[#allocation6 + $0x40] ss:$8 sps:$4 sm:$0xff]  }
 0x1e2   :  { %2126 = vmatpush1.bf16.msra.mxu1 %v3617_v30  ;;  %2045 = vmatprep.subr.bf16.mxu0 %v3624_v61  ;;  %v3680_v30 = vcombine.high %v477_v55, %v481_v56  ;;  %v3682_v61 = vcombine.high %v478_v57, %v482_v58  ;;  %v3994_v55 = vld [vmem:[#allocation6 + $0x64] ss:$8 sps:$4 sm:$0xff]   ;;  %v3953_v56 = vld [vmem:[#allocation7 + $0x60] ss:$8 sps:$4 sm:$0xff]  }
 0x1e3   :  { %2127 = vmatprep.subr.bf16.mxu1 %v3626_v62  ;;  %v485_v62 = vld [vmem:[#allocation4 + $0x750] sm:$0xff] }
 0x1e4   :  { %v3687_v12 = vcombine.low %v485_v62, %v489_v1 }
 0x1e5   :  { %2046 = vmatpush1.bf16.msra.mxu0 %v3623_v5  ;;  %v3681_v5 = vcombine.low %v478_v57, %v482_v58  ;;  %v3958_v57 = vld [vmem:[#allocation7 + $0x74] ss:$8 sps:$4 sm:$0xff]   ;;  %v3992_v58 = vld [vmem:[#allocation6 + $0x60] ss:$8 sps:$4 sm:$0xff]  }
 0x1e6   :  { %2128 = vmatpush1.bf16.msra.mxu1 %v3625_v6  ;;  %2047 = vmatprep.subr.bf16.mxu0 %v3632_v7  ;;  %v3688_v6 = vcombine.high %v485_v62, %v489_v1  ;;  %v3690_v7 = vcombine.high %v486_v2, %v490_v3  ;;  %v4006_v62 = vld [vmem:[#allocation6 + $0x84] ss:$8 sps:$4 sm:$0xff]   ;;  %v3965_v1 = vld [vmem:[#allocation6 + $0x100] ss:$8 sps:$4 sm:$0xff]  }
 0x1e7   :  { %2129 = vmatprep.subr.bf16.mxu1 %v3634_v8  ;;  %v493_v8 = vld [vmem:[#allocation4 + $0x790] sm:$0xff] }
 0x1e8   :  { %v3695_v25 = vcombine.low %v493_v8, %v497_v9 }
 0x1e9   :  { %2048 = vmatpush1.bf16.msra.mxu0 %v3631_v13  ;;  %v3689_v13 = vcombine.low %v486_v2, %v490_v3  ;;  %v2302_v2 = vld [vmem:[%s4531_s1] sm:$0xf]  ;;  %v3973_v3 = vld [vmem:[#allocation6 + $0x114] ss:$8 sps:$4 sm:$0xff]  }
 0x1ea   :  { %2130 = vmatpush1.bf16.msra.mxu1 %v3633_v14  ;;  %2049 = vmatprep.subr.bf16.mxu0 %v3640_v15  ;;  %v3696_v14 = vcombine.high %v493_v8, %v497_v9  ;;  %v3698_v15 = vcombine.high %v494_v10, %v498_v11  ;;  %v4010_v8 = vld [vmem:[#allocation6 + $0x90] ss:$8 sps:$4 sm:$0xff]   ;;  %v4018_v9 = vld [vmem:[#allocation6 + $0xa4] ss:$8 sps:$4 sm:$0xff]  }
 0x1eb   :  { %2131 = vmatprep.subr.bf16.mxu1 %v3642_v16  ;;  %v501_v16 = vld [vmem:[#allocation4 + $0x7d0] sm:$0xff] }
 0x1ed   :  { %2050 = vmatpush1.bf16.msra.mxu0 %v3639_v26  ;;  %v3697_v26 = vcombine.low %v494_v10, %v498_v11  ;;  %v3977_v10 = vld [vmem:[#allocation6 + $0x120] ss:$8 sps:$4 sm:$0xff]   ;;  %v3985_v11 = vld [vmem:[#allocation6 + $0x134] ss:$8 sps:$4 sm:$0xff]  }
 0x1ee   :  { %2132 = vmatpush1.bf16.msra.mxu1 %v3641_v27  ;;  %2051 = vmatprep.subr.bf16.mxu0 %v3648_v29  ;;  %v3704_v27 = vcombine.high %v501_v16, %v505_v22  ;;  %v3706_v29 = vcombine.high %v502_v23, %v506_v24  ;;  %v3989_v23 = vld [vmem:[#allocation6 + $0x140] ss:$8 sps:$4 sm:$0xff]   ;;  %v3997_v24 = vld [vmem:[#allocation6 + $0x154] ss:$8 sps:$4 sm:$0xff]  }
 0x1ef   :  { %2133 = vmatprep.subr.bf16.mxu1 %v3650_v31  ;;  %v3703_v31 = vcombine.low %v501_v16, %v505_v22  ;;  %v4022_v16 = vld [vmem:[#allocation6 + $0xb0] ss:$8 sps:$4 sm:$0xff]   ;;  %v4030_v22 = vld [vmem:[#allocation6 + $0xc4] ss:$8 sps:$4 sm:$0xff]  }
 0x1f1   :  { %2052 = vmatpush1.bf16.msra.mxu0 %v3647_v35  ;;  %v3940_v35 = vld [vmem:[#allocation7 + $0x14] ss:$8 sps:$4 sm:$0xff]  }
 0x1f2   :  { %2134 = vmatpush1.bf16.msra.mxu1 %v3649_v36  ;;  %2053 = vmatprep.subr.bf16.mxu0 %v3656_v37  ;;  %v3959_v36 = vld [vmem:[#allocation6] ss:$8 sps:$4 sm:$0xff]   ;;  %v3964_v37 = vld [vmem:[#allocation6 + $0x14] ss:$8 sps:$4 sm:$0xff]  }
 0x1f3   :  { %2135 = vmatprep.subr.bf16.mxu1 %v3658_v38  ;;  %v3938_v38 = vld [vmem:[#allocation7 + $0x10] ss:$8 sps:$4 sm:$0xff]  }
 0x1f5   :  { %2054 = vmatpush1.bf16.msra.mxu0 %v3655_v45  ;;  %v3946_v45 = vld [vmem:[#allocation7 + $0x34] ss:$8 sps:$4 sm:$0xff]  }
 0x1f6   :  { %2136 = vmatpush1.bf16.msra.mxu1 %v3657_v46  ;;  %2055 = vmatprep.subr.bf16.mxu0 %v3664_v44  ;;  %v3968_v46 = vld [vmem:[#allocation6 + $0x20] ss:$8 sps:$4 sm:$0xff]   ;;  %v3976_v44 = vld [vmem:[#allocation6 + $0x34] ss:$8 sps:$4 sm:$0xff]  }
 0x1f7   :  { %2137 = vmatprep.subr.bf16.mxu1 %v3666_v47  ;;  %v3949_v47 = vld [vmem:[#allocation7 + $0x44] ss:$8 sps:$4 sm:$0xff]  }
 0x1f9   :  { %2056 = vmatpush1.bf16.msra.mxu0 %v3663_v19  ;;  %v3988_v19 = vld [vmem:[#allocation6 + $0x54] ss:$8 sps:$4 sm:$0xff]  }
 0x1fa   :  { %2138 = vmatpush1.bf16.msra.mxu1 %v3665_v51  ;;  %2057 = vmatprep.subr.bf16.mxu0 %v3672_v53  ;;  %v3950_v51 = vld [vmem:[#allocation7 + $0x50] ss:$8 sps:$4 sm:$0xff]   ;;  %v3955_v53 = vld [vmem:[#allocation7 + $0x64] ss:$8 sps:$4 sm:$0xff]  }
 0x1fb   :  { %2139 = vmatprep.subr.bf16.mxu1 %v3674_v54  ;;  %v3986_v54 = vld [vmem:[#allocation6 + $0x50] ss:$8 sps:$4 sm:$0xff]  }
 0x1fd   :  { %2058 = vmatpush1.bf16.msra.mxu0 %v3671_v59  ;;  %v4000_v59 = vld [vmem:[#allocation6 + $0x74] ss:$8 sps:$4 sm:$0xff]  }
 0x1fe   :  { %2140 = vmatpush1.bf16.msra.mxu1 %v3673_v60  ;;  %2059 = vmatprep.subr.bf16.mxu0 %v3680_v30  ;;  %v3956_v60 = vld [vmem:[#allocation7 + $0x70] ss:$8 sps:$4 sm:$0xff]   ;;  %v3967_v30 = vld [vmem:[#allocation6 + $0x104] ss:$8 sps:$4 sm:$0xff]  }
 0x1ff   :  { %2141 = vmatprep.subr.bf16.mxu1 %v3682_v61  ;;  %v3998_v61 = vld [vmem:[#allocation6 + $0x70] ss:$8 sps:$4 sm:$0xff]  }
 0x201   :  { %2060 = vmatpush1.bf16.msra.mxu0 %v3679_v4  ;;  %v4004_v4 = vld [vmem:[#allocation6 + $0x80] ss:$8 sps:$4 sm:$0xff]  }
 0x202   :  { %2142 = vmatpush1.bf16.msra.mxu1 %v3681_v5  ;;  %2061 = vmatprep.subr.bf16.mxu0 %v3688_v6  ;;  %v4012_v5 = vld [vmem:[#allocation6 + $0x94] ss:$8 sps:$4 sm:$0xff]   ;;  %v3971_v6 = vld [vmem:[#allocation6 + $0x110] ss:$8 sps:$4 sm:$0xff]  }
 0x203   :  { %2143 = vmatprep.subr.bf16.mxu1 %v3690_v7  ;;  %v3979_v7 = vld [vmem:[#allocation6 + $0x124] ss:$8 sps:$4 sm:$0xff]  }
 0x205   :  { %2062 = vmatpush1.bf16.msra.mxu0 %v3687_v12  ;;  %v4016_v12 = vld [vmem:[#allocation6 + $0xa0] ss:$8 sps:$4 sm:$0xff]  }
 0x206   :  { %2144 = vmatpush1.bf16.msra.mxu1 %v3689_v13  ;;  %2063 = vmatprep.subr.bf16.mxu0 %v3696_v14  ;;  %v4024_v13 = vld [vmem:[#allocation6 + $0xb4] ss:$8 sps:$4 sm:$0xff]   ;;  %v3983_v14 = vld [vmem:[#allocation6 + $0x130] ss:$8 sps:$4 sm:$0xff]  }
 0x207   :  { %2145 = vmatprep.subr.bf16.mxu1 %v3698_v15  ;;  %v3991_v15 = vld [vmem:[#allocation6 + $0x144] ss:$8 sps:$4 sm:$0xff]  }
 0x209   :  { %2064 = vmatpush1.bf16.msra.mxu0 %v3695_v25  ;;  %v4028_v25 = vld [vmem:[#allocation6 + $0xc0] ss:$8 sps:$4 sm:$0xff]  }
 0x20a   :  { %2146 = vmatpush1.bf16.msra.mxu1 %v3697_v26  ;;  %2065 = vmatprep.subr.bf16.mxu0 %v3704_v27  ;;  %v4036_v26 = vld [vmem:[#allocation6 + $0xd4] ss:$8 sps:$4 sm:$0xff]   ;;  %v3995_v27 = vld [vmem:[#allocation6 + $0x150] ss:$8 sps:$4 sm:$0xff]  }
 0x20b   :  { %2147 = vmatprep.subr.bf16.mxu1 %v3706_v29  ;;  %v4003_v29 = vld [vmem:[#allocation6 + $0x164] ss:$8 sps:$4 sm:$0xff]  }
 0x20d   :  { %2066 = vmatpush1.bf16.msra.mxu0 %v3703_v31  ;;  %v4034_v31 = vld [vmem:[#allocation6 + $0xd0] ss:$8 sps:$4 sm:$0xff]  }
 0x20e   :  { %2148 = vmatpush1.bf16.msra.mxu1 %v3705_v32  ;;  %2399 = vmatprep.subr.bf16.mxu0 %v3937_v42  ;;  %v4042_v32 = vld [vmem:[#allocation6 + $0xe4] ss:$8 sps:$4 sm:$0xff]   ;;  %v4001_v42 = vld [vmem:[#allocation6 + $0x160] ss:$8 sps:$4 sm:$0xff]  }
 0x20f   :  { %3080 = vmatprep.subr.bf16.mxu1 %v3961_v33  ;;  %v4009_v33 = vld [vmem:[#allocation6 + $0x174] ss:$8 sps:$4 sm:$0xff]  }
 0x210   :  { %2068 = vmatmul.mubr.bf16.vlgmr.msra.gmra.mrb[8].mxu0 %v4489_v63 }
 0x211   :  { %2150 = vmatmul.mubr.bf16.vlgmr.msra.gmra.mrb[8].mxu1 %v4489_v63  ;;  %2400 = vmatpush1.bf16.msra.mxu0 %v3935_v34  ;;  %v3944_v63 = vld [vmem:[#allocation7 + $0x30] ss:$8 sps:$4 sm:$0xff]   ;;  %v4040_v34 = vld [vmem:[#allocation6 + $0xe0] ss:$8 sps:$4 sm:$0xff]  }
 0x212   :  { %2401 = vmatprep.subr.bf16.mxu0 %v3940_v35  ;;  %3081 = vmatpush1.bf16.msra.mxu1 %v3959_v36  ;;  %v4048_v35 = vld [vmem:[#allocation6 + $0xf4] ss:$8 sps:$4 sm:$0xff]   ;;  %v4007_v36 = vld [vmem:[#allocation6 + $0x170] ss:$8 sps:$4 sm:$0xff]  }
 0x213   :  { %2431 = vmatprep.mubr.bf16.mxu0 %v4321_v0  ;;  %3082 = vmatprep.subr.bf16.mxu1 %v3964_v37  ;;  %v3947_v0 = vld [vmem:[#allocation7 + $0x40] ss:$8 sps:$4 sm:$0xff]   ;;  %v4015_v37 = vld [vmem:[#allocation6 + $0x184] ss:$8 sps:$4 sm:$0xff]  }
 0x215   :  { %2402 = vmatpush1.bf16.msra.mxu0 %v3938_v38  ;;  %v4046_v38 = vld [vmem:[#allocation6 + $0xf0] ss:$8 sps:$4 sm:$0xff]  }
 0x216   :  { %2403 = vmatprep.subr.bf16.mxu0 %v3943_v39  ;;  %3083 = vmatpush1.bf16.msra.mxu1 %v3962_v40  ;;  %v4057_v39 = vld [vmem:[#allocation6 + $0x204] ss:$8 sps:$4 sm:$0xff]   ;;  %v4013_v40 = vld [vmem:[#allocation6 + $0x180] ss:$8 sps:$4 sm:$0xff]  }
 0x217   :  { %3084 = vmatprep.subr.bf16.mxu1 %v3970_v41  ;;  %v4021_v41 = vld [vmem:[#allocation6 + $0x194] ss:$8 sps:$4 sm:$0xff]  }
 0x219   :  { %2404 = vmatpush1.bf16.msra.mxu0 %v3941_v43  ;;  %v4019_v43 = vld [vmem:[#allocation6 + $0x190] ss:$8 sps:$4 sm:$0xff]  }
 0x21a   :  { %2405 = vmatprep.subr.bf16.mxu0 %v3946_v45  ;;  %3085 = vmatpush1.bf16.msra.mxu1 %v3968_v46  ;;  %v4027_v45 = vld [vmem:[#allocation6 + $0x1a4] ss:$8 sps:$4 sm:$0xff]   ;;  %v4025_v46 = vld [vmem:[#allocation6 + $0x1a0] ss:$8 sps:$4 sm:$0xff]  }
 0x21b   :  { %3086 = vmatprep.subr.bf16.mxu1 %v3976_v44  ;;  %v4033_v44 = vld [vmem:[#allocation6 + $0x1b4] ss:$8 sps:$4 sm:$0xff]  }
 0x21d   :  { %2406 = vmatpush1.bf16.msra.mxu0 %v3944_v63  ;;  %v4031_v63 = vld [vmem:[#allocation6 + $0x1b0] ss:$8 sps:$4 sm:$0xff]  }
 0x21e   :  { %2407 = vmatprep.subr.bf16.mxu0 %v3949_v47  ;;  %3087 = vmatpush1.bf16.msra.mxu1 %v3974_v48  ;;  %v4039_v47 = vld [vmem:[#allocation6 + $0x1c4] ss:$8 sps:$4 sm:$0xff]   ;;  %v4037_v48 = vld [vmem:[#allocation6 + $0x1c0] ss:$8 sps:$4 sm:$0xff]  }
 0x21f   :  { %3088 = vmatprep.subr.bf16.mxu1 %v3982_v49  ;;  %v4505_v49 = vld [vmem:[#allocation10 + $0x1] ss:$4 sm:$0xff] }
 0x221   :  { %2408 = vmatpush1.bf16.msra.mxu0 %v3947_v0  ;;  %v4045_v0 = vld [vmem:[#allocation6 + $0x1d4] ss:$8 sps:$4 sm:$0xff]  }
 0x222   :  { %2409 = vmatprep.subr.bf16.mxu0 %v3952_v50  ;;  %3089 = vmatpush1.bf16.msra.mxu1 %v3980_v52  ;;  %v513_v50 = vrot.slane %v4505_v49, %v4455_v18  ;;  %v517_v52 = vrot.slane %v4505_v49, %v4460_v20 }
 0x223   :  { %3090 = vmatprep.subr.bf16.mxu1 %v3988_v19  ;;  %v525_v19 = vrot.slane %v4505_v49, %v131_v21 }
 0x225   :  { %2410 = vmatpush1.bf16.msra.mxu0 %v3950_v51  ;;  %v4043_v51 = vld [vmem:[#allocation6 + $0x1d0] ss:$8 sps:$4 sm:$0xff]  }
 0x226   :  { %2411 = vmatprep.subr.bf16.mxu0 %v3955_v53  ;;  %3091 = vmatpush1.bf16.msra.mxu1 %v3986_v54  ;;  %v521_v53 = vrot.slane %v4505_v49, %v127_v28  ;;  %v4051_v54 = vld [vmem:[#allocation6 + $0x1e4] ss:$8 sps:$4 sm:$0xff]  }
 0x227   :  { %3092 = vmatprep.subr.bf16.mxu1 %v3994_v55 }
 0x229   :  { %2412 = vmatpush1.bf16.msra.mxu0 %v3953_v56 }
 0x22a   :  { %2413 = vmatprep.subr.bf16.mxu0 %v3958_v57  ;;  %3093 = vmatpush1.bf16.msra.mxu1 %v3992_v58 }
 0x22b   :  { %3094 = vmatprep.subr.bf16.mxu1 %v4000_v59 }
 0x22d   :  { %2414 = vmatpush1.bf16.msra.mxu0 %v3956_v60 }
 0x22e   :  { %3121 = vmatprep.subr.bf16.mxu0 %v3967_v30  ;;  %3095 = vmatpush1.bf16.msra.mxu1 %v3998_v61 }
 0x22f   :  { %3096 = vmatprep.subr.bf16.mxu1 %v4006_v62 }
 0x230   :  { %2432 = vmatmul.mubr.bf16.vlgmr.msra.gmra.mrb[12].mxu0 %v2302_v2 }
 0x231   :  { %3122 = vmatpush1.bf16.msra.mxu0 %v3965_v1  ;;  %v4049_v1 = vld [vmem:[#allocation6 + $0x1e0] ss:$8 sps:$4 sm:$0xff]  }
 0x232   :  { %3123 = vmatprep.subr.bf16.mxu0 %v3973_v3  ;;  %3097 = vmatpush1.bf16.msra.mxu1 %v4004_v4 }
 0x233   :  { %3098 = vmatprep.subr.bf16.mxu1 %v4012_v5  ;;  %v4054_v5 = vld [vmem:[#allocation6 + $0x1f4] ss:$8 sps:$4 sm:$0xff]  }
 0x235   :  { %3124 = vmatpush1.bf16.msra.mxu0 %v3971_v6 }
 0x236   :  { %3125 = vmatprep.subr.bf16.mxu0 %v3979_v7  ;;  %3099 = vmatpush1.bf16.msra.mxu1 %v4010_v8 }
 0x237   :  { %3100 = vmatprep.subr.bf16.mxu1 %v4018_v9  ;;  %v4052_v9 = vld [vmem:[#allocation6 + $0x1f0] ss:$8 sps:$4 sm:$0xff]  }
 0x239   :  { %3126 = vmatpush1.bf16.msra.mxu0 %v3977_v10  ;;  %v4055_v10 = vld [vmem:[#allocation6 + $0x200] ss:$8 sps:$4 sm:$0xff]  }
 0x23a   :  { %3127 = vmatprep.subr.bf16.mxu0 %v3985_v11  ;;  %3101 = vmatpush1.bf16.msra.mxu1 %v4016_v12 }
 0x23b   :  { %3102 = vmatprep.subr.bf16.mxu1 %v4024_v13  ;;  %v4060_v13 = vld [vmem:[#allocation6 + $0x304] ss:$8 sps:$4 sm:$0xff]  }
 0x23d   :  { %3128 = vmatpush1.bf16.msra.mxu0 %v3983_v14  ;;  %v4063_v14 = vld [vmem:[#allocation6 + $0x214] ss:$8 sps:$4 sm:$0xff]  }
 0x23e   :  { %3129 = vmatprep.subr.bf16.mxu0 %v3991_v15  ;;  %3103 = vmatpush1.bf16.msra.mxu1 %v4022_v16  ;;  %v4058_v15 = vld [vmem:[#allocation6 + $0x300] ss:$8 sps:$4 sm:$0xff]   ;;  %v4061_v16 = vld [vmem:[#allocation6 + $0x210] ss:$8 sps:$4 sm:$0xff]  }
 0x23f   :  { %3104 = vmatprep.subr.bf16.mxu1 %v4030_v22 }
 0x241   :  { %3130 = vmatpush1.bf16.msra.mxu0 %v3989_v23  ;;  %v4066_v23 = vld [vmem:[#allocation6 + $0x314] ss:$8 sps:$4 sm:$0xff]  }
 0x242   :  { %3131 = vmatprep.subr.bf16.mxu0 %v3997_v24  ;;  %3105 = vmatpush1.bf16.msra.mxu1 %v4028_v25  ;;  %v4069_v24 = vld [vmem:[#allocation6 + $0x224] ss:$8 sps:$4 sm:$0xff]   ;;  %v4064_v25 = vld [vmem:[#allocation6 + $0x310] ss:$8 sps:$4 sm:$0xff]  }
 0x243   :  { %3106 = vmatprep.subr.bf16.mxu1 %v4036_v26  ;;  %v4067_v26 = vld [vmem:[#allocation6 + $0x220] ss:$8 sps:$4 sm:$0xff]  }
 0x245   :  { %3132 = vmatpush1.bf16.msra.mxu0 %v3995_v27  ;;  %v4072_v27 = vld [vmem:[#allocation6 + $0x324] ss:$8 sps:$4 sm:$0xff]  }
 0x246   :  { %3133 = vmatprep.subr.bf16.mxu0 %v4003_v29  ;;  %3107 = vmatpush1.bf16.msra.mxu1 %v4034_v31  ;;  %v4075_v29 = vld [vmem:[#allocation6 + $0x234] ss:$8 sps:$4 sm:$0xff]   ;;  %v4070_v31 = vld [vmem:[#allocation6 + $0x320] ss:$8 sps:$4 sm:$0xff]  }
 0x247   :  { %3108 = vmatprep.subr.bf16.mxu1 %v4042_v32  ;;  %v4073_v32 = vld [vmem:[#allocation6 + $0x230] ss:$8 sps:$4 sm:$0xff]  }
 0x249   :  { %3134 = vmatpush1.bf16.msra.mxu0 %v4001_v42  ;;  %v4078_v42 = vld [vmem:[#allocation6 + $0x334] ss:$8 sps:$4 sm:$0xff]  }
 0x24a   :  { %3135 = vmatprep.subr.bf16.mxu0 %v4009_v33  ;;  %3109 = vmatpush1.bf16.msra.mxu1 %v4040_v34  ;;  %v4081_v33 = vld [vmem:[#allocation6 + $0x244] ss:$8 sps:$4 sm:$0xff]   ;;  %v4076_v34 = vld [vmem:[#allocation6 + $0x330] ss:$8 sps:$4 sm:$0xff]  }
 0x24b   :  { %3110 = vmatprep.subr.bf16.mxu1 %v4048_v35  ;;  %v4079_v35 = vld [vmem:[#allocation6 + $0x240] ss:$8 sps:$4 sm:$0xff]  }
 0x24d   :  { %3136 = vmatpush1.bf16.msra.mxu0 %v4007_v36  ;;  %v4084_v36 = vld [vmem:[#allocation6 + $0x344] ss:$8 sps:$4 sm:$0xff]  }
 0x24e   :  { %3137 = vmatprep.subr.bf16.mxu0 %v4015_v37  ;;  %3111 = vmatpush1.bf16.msra.mxu1 %v4046_v38  ;;  %v4087_v37 = vld [vmem:[#allocation6 + $0x254] ss:$8 sps:$4 sm:$0xff]   ;;  %v4082_v38 = vld [vmem:[#allocation6 + $0x340] ss:$8 sps:$4 sm:$0xff]  }
 0x24f   :  { %3162 = vmatprep.subr.bf16.mxu1 %v4057_v39  ;;  %v4085_v39 = vld [vmem:[#allocation6 + $0x250] ss:$8 sps:$4 sm:$0xff]  }
 0x251   :  { %3138 = vmatpush1.bf16.msra.mxu0 %v4013_v40  ;;  %v4090_v40 = vld [vmem:[#allocation6 + $0x354] ss:$8 sps:$4 sm:$0xff]  }
 0x252   :  { %3139 = vmatprep.subr.bf16.mxu0 %v4021_v41  ;;  %v4093_v41 = vld [vmem:[#allocation6 + $0x264] ss:$8 sps:$4 sm:$0xff]  }
 0x255   :  { %3140 = vmatpush1.bf16.msra.mxu0 %v4019_v43  ;;  %v4088_v43 = vld [vmem:[#allocation6 + $0x350] ss:$8 sps:$4 sm:$0xff]  }
 0x256   :  { %3141 = vmatprep.subr.bf16.mxu0 %v4027_v45  ;;  %v4091_v45 = vld [vmem:[#allocation6 + $0x260] ss:$8 sps:$4 sm:$0xff]  }
 0x259   :  { %3142 = vmatpush1.bf16.msra.mxu0 %v4025_v46  ;;  %v4096_v46 = vld [vmem:[#allocation6 + $0x364] ss:$8 sps:$4 sm:$0xff]  }
 0x25a   :  { %3143 = vmatprep.subr.bf16.mxu0 %v4033_v44  ;;  %v4099_v44 = vld [vmem:[#allocation6 + $0x274] ss:$8 sps:$4 sm:$0xff]  }
 0x25d   :  { %3144 = vmatpush1.bf16.msra.mxu0 %v4031_v63  ;;  %v4094_v63 = vld [vmem:[#allocation6 + $0x360] ss:$8 sps:$4 sm:$0xff]  }
 0x25e   :  { %3145 = vmatprep.subr.bf16.mxu0 %v4039_v47  ;;  %v4097_v47 = vld [vmem:[#allocation6 + $0x270] ss:$8 sps:$4 sm:$0xff]  }
 0x261   :  { %3146 = vmatpush1.bf16.msra.mxu0 %v4037_v48  ;;  %v4102_v48 = vld [vmem:[#allocation6 + $0x374] ss:$8 sps:$4 sm:$0xff]  }
 0x262   :  { %3147 = vmatprep.subr.bf16.mxu0 %v4045_v0  ;;  %v4105_v0 = vld [vmem:[#allocation6 + $0x284] ss:$8 sps:$4 sm:$0xff]  }
 0x263   :  { %v1905_v55 = vpop.f32.mrb[4].mxu0  ;;  %v1987_v56 = vpop.f32.mrb[4].mxu1 }
 0x264   :  { %v3890_v57 = vadd.f32 %v1905_v55, %v513_v50  ;;  %v1907_v58 = vpop.f32.mrb[5].mxu0  ;;  %v1989_v59 = vpop.f32.mrb[5].mxu1  ;;  %v3892_v21 = vadd.f32 %v1987_v56, %v521_v53  ;;  %v4100_v50 = vld [vmem:[#allocation6 + $0x370] ss:$8 sps:$4 sm:$0xff]   ;;  %v4106_v53 = vld [vmem:[#allocation6 + $0x380] ss:$8 sps:$4 sm:$0xff]  }
 0x265   :  { %v3891_v60 = vadd.f32 %v1907_v58, %v517_v52  ;;  %v3893_v30 = vadd.f32 %v1989_v59, %v525_v19  ;;  %v1909_v61 = vpop.f32.mrb[6].mxu0  ;;  %v1991_v62 = vpop.f32.mrb[6].mxu1  ;;  %3148 = vmatpush1.bf16.msra.mxu0 %v4043_v51  ;;  %v4103_v52 = vld [vmem:[#allocation6 + $0x280] ss:$8 sps:$4 sm:$0xff]   ;;  %v4108_v19 = vld [vmem:[#allocation6 + $0x384] ss:$8 sps:$4 sm:$0xff]  }
 0x266   :  { %v2158_v2 = vmax.f32 %v3890_v57, 0.0  ;;  %v1910_v3 = vpop.f32.mrb[7].mxu0  ;;  %v1992_v4 = vpop.f32.mrb[7].mxu1  ;;  %3149 = vmatprep.subr.bf16.mxu0 %v4051_v54  ;;  %v2160_v12 = vmax.f32 %v3892_v21, 0.0  ;;  %v4111_v51 = vld [vmem:[#allocation6 + $0x294] ss:$8 sps:$4 sm:$0xff]  }
 0x267   :  { %v2159_v28 = vmax.f32 %v3891_v60, 0.0  ;;  %v2161_v6 = vmax.f32 %v3893_v30, 0.0  ;;  %v4109_v54 = vld [vmem:[#allocation6 + $0x290] ss:$8 sps:$4 sm:$0xff]   ;;  %v4114_v55 = vld [vmem:[#allocation6 + $0x394] ss:$8 sps:$4 sm:$0xff]  }
 0x268   :  { %v2166_v11 = vpack.c.bf16 %v2158_v2, %v2158_v2  ;;  %v2168_v22 = vpack.c.bf16 %v2160_v12, %v2160_v12  ;;  %v4117_v56 = vld [vmem:[#allocation6 + $0x2a4] ss:$8 sps:$4 sm:$0xff]   ;;  %v4112_v57 = vld [vmem:[#allocation6 + $0x390] ss:$8 sps:$4 sm:$0xff]   ;;  %v4115_v58 = vld [vmem:[#allocation6 + $0x2a0] ss:$8 sps:$4 sm:$0xff]  }
 0x269   :  { %v2167_v7 = vpack.c.bf16 %v2159_v28, %v2159_v28  ;;  %v2169_v8 = vpack.c.bf16 %v2161_v6, %v2161_v6  ;;  %3150 = vmatpush1.bf16.msra.mxu0 %v4049_v1  ;;  %v4120_v59 = vld [vmem:[#allocation6 + $0x3a4] ss:$8 sps:$4 sm:$0xff]   ;;  %v4123_v60 = vld [vmem:[#allocation6 + $0x2b4] ss:$8 sps:$4 sm:$0xff]   ;;  %v4118_v30 = vld [vmem:[#allocation6 + $0x3a0] ss:$8 sps:$4 sm:$0xff]  }
 0x26a   :  { %3151 = vmatprep.subr.bf16.mxu0 %v4054_v5  ;;  %v4121_v61 = vld [vmem:[#allocation6 + $0x2b0] ss:$8 sps:$4 sm:$0xff]   ;;  %v4126_v62 = vld [vmem:[#allocation6 + $0x3b4] ss:$8 sps:$4 sm:$0xff]   ;;  %v4129_v1 = vld [vmem:[#allocation6 + $0x2c4] ss:$8 sps:$4 sm:$0xff]  }
 0x26b   :  { %3112 = vmatprep.mubr.bf16.mxu1 %v2167_v7  ;;  %3153 = vmatprep.mubr.bf16.mxu0 %v2169_v8  ;;  %v4124_v2 = vld [vmem:[#allocation6 + $0x3b0] ss:$8 sps:$4 sm:$0xff]   ;;  %v4127_v21 = vld [vmem:[#allocation6 + $0x2c0] ss:$8 sps:$4 sm:$0xff]   ;;  %v4132_v3 = vld [vmem:[#allocation6 + $0x3c4] ss:$8 sps:$4 sm:$0xff]  }
 0x26c   :  { %3113 = vmatmul.mubr.bf16.vlgmr.msra.gmra.mrb[12].mxu1 %v2166_v11  ;;  %v4135_v4 = vld [vmem:[#allocation6 + $0x2d4] ss:$8 sps:$4 sm:$0xff]   ;;  %v4130_v5 = vld [vmem:[#allocation6 + $0x3c0] ss:$8 sps:$4 sm:$0xff]   ;;  %v4133_v28 = vld [vmem:[#allocation6 + $0x2d0] ss:$8 sps:$4 sm:$0xff]  }
 0x26d   :  { %3152 = vmatpush1.bf16.msra.mxu0 %v4052_v9  ;;  %3163 = vmatpush1.bf16.msra.mxu1 %v4055_v10  ;;  %v4138_v6 = vld [vmem:[#allocation6 + $0x3d4] ss:$8 sps:$4 sm:$0xff]   ;;  %v4141_v7 = vld [vmem:[#allocation6 + $0x2e4] ss:$8 sps:$4 sm:$0xff]   ;;  %v4136_v8 = vld [vmem:[#allocation6 + $0x3d0] ss:$8 sps:$4 sm:$0xff]  }
 0x26e   :  { %3203 = vmatprep.subr.bf16.mxu0 %v4060_v13  ;;  %3164 = vmatprep.subr.bf16.mxu1 %v4063_v14  ;;  %v4139_v9 = vld [vmem:[#allocation6 + $0x2e0] ss:$8 sps:$4 sm:$0xff]   ;;  %v4144_v10 = vld [vmem:[#allocation6 + $0x3e4] ss:$8 sps:$4 sm:$0xff]   ;;  %v4147_v11 = vld [vmem:[#allocation6 + $0x2f4] ss:$8 sps:$4 sm:$0xff]  }
 0x26f   :  { %v4142_v12 = vld [vmem:[#allocation6 + $0x3e0] ss:$8 sps:$4 sm:$0xff]   ;;  %v4145_v13 = vld [vmem:[#allocation6 + $0x2f0] ss:$8 sps:$4 sm:$0xff]   ;;  %v4150_v14 = vld [vmem:[#allocation6 + $0x3f4] ss:$8 sps:$4 sm:$0xff]  }
 0x270   :  { %3154 = vmatmul.mubr.bf16.vlgmr.msra.gmra.mrb[16].mxu0 %v2168_v22  ;;  %v528_v22 = vsub.s32 4, %v4452_v17 }
 0x271   :  { %3204 = vmatpush1.bf16.msra.mxu0 %v4058_v15  ;;  %3165 = vmatpush1.bf16.msra.mxu1 %v4061_v16  ;;  %v4148_v15 = vld [vmem:[#allocation6 + $0x3f0] ss:$8 sps:$4 sm:$0xff]   ;;  %v4151_v16 = vld [vmem:[#allocation9 + $0x40] sm:$0xff]  }
 0x272   :  { %3205 = vmatprep.subr.bf16.mxu0 %v4066_v23  ;;  %3166 = vmatprep.subr.bf16.mxu1 %v4069_v24  ;;  %v536_v23 = vsub.s32 6, %v4452_v17  ;;  %v532_v24 = vsub.s32 5, %v4452_v17 }
 0x275   :  { %3206 = vmatpush1.bf16.msra.mxu0 %v4064_v25  ;;  %3167 = vmatpush1.bf16.msra.mxu1 %v4067_v26  ;;  %v540_v25 = vsub.s32 7, %v4452_v17  ;;  %v529_v26 = vrot.slane %v4505_v49, %v528_v22 }
 0x276   :  { %3207 = vmatprep.subr.bf16.mxu0 %v4072_v27  ;;  %3168 = vmatprep.subr.bf16.mxu1 %v4075_v29  ;;  %v537_v27 = vrot.slane %v4505_v49, %v536_v23  ;;  %v533_v29 = vrot.slane %v4505_v49, %v532_v24 }
 0x279   :  { %3208 = vmatpush1.bf16.msra.mxu0 %v4070_v31  ;;  %3169 = vmatpush1.bf16.msra.mxu1 %v4073_v32  ;;  %v541_v31 = vrot.slane %v4505_v49, %v540_v25 }
 0x27a   :  { %3209 = vmatprep.subr.bf16.mxu0 %v4078_v42  ;;  %3170 = vmatprep.subr.bf16.mxu1 %v4081_v33 }
 0x27d   :  { %3210 = vmatpush1.bf16.msra.mxu0 %v4076_v34  ;;  %3171 = vmatpush1.bf16.msra.mxu1 %v4079_v35 }
 0x27e   :  { %3211 = vmatprep.subr.bf16.mxu0 %v4084_v36  ;;  %3172 = vmatprep.subr.bf16.mxu1 %v4087_v37 }
 0x281   :  { %3212 = vmatpush1.bf16.msra.mxu0 %v4082_v38  ;;  %3173 = vmatpush1.bf16.msra.mxu1 %v4085_v39 }
 0x282   :  { %3213 = vmatprep.subr.bf16.mxu0 %v4090_v40  ;;  %3174 = vmatprep.subr.bf16.mxu1 %v4093_v41 }
 0x285   :  { %3214 = vmatpush1.bf16.msra.mxu0 %v4088_v43  ;;  %3175 = vmatpush1.bf16.msra.mxu1 %v4091_v45 }
 0x286   :  { %3215 = vmatprep.subr.bf16.mxu0 %v4096_v46  ;;  %3176 = vmatprep.subr.bf16.mxu1 %v4099_v44 }
 0x289   :  { %3216 = vmatpush1.bf16.msra.mxu0 %v4094_v63  ;;  %3177 = vmatpush1.bf16.msra.mxu1 %v4097_v47  ;;  %v4152_v47 = vld [vmem:[#allocation9] sm:$0xff]  }
 0x28a   :  { %3217 = vmatprep.subr.bf16.mxu0 %v4102_v48  ;;  %3178 = vmatprep.subr.bf16.mxu1 %v4105_v0  ;;  %v4153_v0 = vld [vmem:[#allocation9 + $0x48] sm:$0xff]  }
 0x28d   :  { %3218 = vmatpush1.bf16.msra.mxu0 %v4100_v50  ;;  %3179 = vmatpush1.bf16.msra.mxu1 %v4103_v52  ;;  %v4154_v52 = vld [vmem:[#allocation9 + $0x8] sm:$0xff]  }
 0x28e   :  { %3219 = vmatprep.subr.bf16.mxu0 %v4108_v19  ;;  %3180 = vmatprep.subr.bf16.mxu1 %v4111_v51  ;;  %v4155_v19 = vld [vmem:[#allocation9 + $0x50] sm:$0xff]  }
 0x28f   :  { %v4156_v51 = vld [vmem:[#allocation9 + $0x10] sm:$0xff]  }
 0x291   :  { %3220 = vmatpush1.bf16.msra.mxu0 %v4106_v53  ;;  %3181 = vmatpush1.bf16.msra.mxu1 %v4109_v54  ;;  %v4157_v53 = vld [vmem:[#allocation9 + $0x58] sm:$0xff]  }
 0x292   :  { %3221 = vmatprep.subr.bf16.mxu0 %v4114_v55  ;;  %3182 = vmatprep.subr.bf16.mxu1 %v4117_v56  ;;  %v4158_v54 = vld [vmem:[#allocation9 + $0x18] sm:$0xff]   ;;  %v4159_v55 = vld [vmem:[#allocation9 + $0x60] sm:$0xff]  }
 0x293   :  { %v4160_v56 = vld [vmem:[#allocation9 + $0x20] sm:$0xff]  }
 0x295   :  { %3222 = vmatpush1.bf16.msra.mxu0 %v4112_v57  ;;  %3183 = vmatpush1.bf16.msra.mxu1 %v4115_v58 }
 0x296   :  { %3223 = vmatprep.subr.bf16.mxu0 %v4120_v59  ;;  %3184 = vmatprep.subr.bf16.mxu1 %v4123_v60 }
 0x299   :  { %3224 = vmatpush1.bf16.msra.mxu0 %v4118_v30  ;;  %3185 = vmatpush1.bf16.msra.mxu1 %v4121_v61 }
 0x29a   :  { %3225 = vmatprep.subr.bf16.mxu0 %v4126_v62  ;;  %3186 = vmatprep.subr.bf16.mxu1 %v4129_v1  ;;  %v4161_v1 = vld [vmem:[#allocation9 + $0x68] sm:$0xff]  }
 0x29d   :  { %3226 = vmatpush1.bf16.msra.mxu0 %v4124_v2  ;;  %3187 = vmatpush1.bf16.msra.mxu1 %v4127_v21 }
 0x29e   :  { %3227 = vmatprep.subr.bf16.mxu0 %v4132_v3  ;;  %3188 = vmatprep.subr.bf16.mxu1 %v4135_v4  ;;  %v4162_v3 = vld [vmem:[#allocation9 + $0x28] sm:$0xff]  }
 0x2a1   :  { %3228 = vmatpush1.bf16.msra.mxu0 %v4130_v5  ;;  %3189 = vmatpush1.bf16.msra.mxu1 %v4133_v28 }
 0x2a2   :  { %3229 = vmatprep.subr.bf16.mxu0 %v4138_v6  ;;  %3190 = vmatprep.subr.bf16.mxu1 %v4141_v7  ;;  %v4163_v7 = vld [vmem:[#allocation9 + $0x70] sm:$0xff]  }
 0x2a5   :  { %3230 = vmatpush1.bf16.msra.mxu0 %v4136_v8  ;;  %3191 = vmatpush1.bf16.msra.mxu1 %v4139_v9 }
 0x2a6   :  { %3231 = vmatprep.subr.bf16.mxu0 %v4144_v10  ;;  %3192 = vmatprep.subr.bf16.mxu1 %v4147_v11  ;;  %v4164_v10 = vld [vmem:[#allocation9 + $0x30] sm:$0xff]  }
 0x2a9   :  { %3232 = vmatpush1.bf16.msra.mxu0 %v4142_v12  ;;  %3193 = vmatpush1.bf16.msra.mxu1 %v4145_v13  ;;  %v4165_v12 = vld [vmem:[#allocation9 + $0x78] sm:$0xff]  }
 0x2aa   :  { %3233 = vmatprep.subr.bf16.mxu0 %v4150_v14  ;;  %3868 = vmatprep.subr.bf16.mxu1 %v4151_v16  ;;  %v4166_v13 = vld [vmem:[#allocation9 + $0x38] sm:$0xff]   ;;  %v3245_v14 = vld [vmem:[#allocation10 + $0x2] ss:$4 sm:$0x3] }
 0x2ab   :  { %v3250_v23 = vrot.slane %v3245_v14, %v4455_v18 }
 0x2ad   :  { %3234 = vmatpush1.bf16.msra.mxu0 %v4148_v15 }
 0x2e3   :  { %v2069_v32 = vpop.f32.mrb[8].mxu0 }
 0x2e4   :  { %v3894_v42 = vadd.f32 %v2069_v32, %v529_v26  ;;  %v2151_v33 = vpop.f32.mrb[8].mxu1  ;;  %v2071_v34 = vpop.f32.mrb[9].mxu0 }
 0x2e5   :  { %v3896_v35 = vadd.f32 %v2151_v33, %v537_v27  ;;  %v3895_v36 = vadd.f32 %v2071_v34, %v533_v29  ;;  %v2153_v37 = vpop.f32.mrb[9].mxu1  ;;  %v2073_v38 = vpop.f32.mrb[10].mxu0  ;;  %v3254_v27 = vrot.slane %v3245_v14, %v4460_v20 }
 0x2e6   :  { %v2162_v39 = vmax.f32 %v3894_v42, 0.0  ;;  %v3897_v40 = vadd.f32 %v2153_v37, %v541_v31  ;;  %v2155_v41 = vpop.f32.mrb[10].mxu1  ;;  %v2074_v17 = vpop.f32.mrb[11].mxu0 }
 0x2e7   :  { %v2164_v43 = vmax.f32 %v3896_v35, 0.0  ;;  %v2163_v45 = vmax.f32 %v3895_v36, 0.0  ;;  %v2156_v46 = vpop.f32.mrb[11].mxu1  ;;  %v3851_v41 = vld [vmem:[#allocation10 + $0x3] ss:$0 sm:$0xff] }
 0x2e8   :  { %v2165_v44 = vmax.f32 %v3897_v40, 0.0  ;;  %v2170_v48 = vpack.c.bf16 %v2162_v39, %v2162_v39 }
 0x2e9   :  { %v2171_v63 = vpack.c.bf16 %v2163_v45, %v2163_v45  ;;  %v2172_v50 = vpack.c.bf16 %v2164_v43, %v2164_v43 }
 0x2ea   :  { %v2173_v49 = vpack.c.bf16 %v2165_v44, %v2165_v44 }
 0x2eb   :  { %3194 = vmatprep.mubr.bf16.mxu1 %v2171_v63 }
 0x2ec   :  { %3235 = vmatprep.mubr.bf16.mxu0 %v2173_v49  ;;  %3195 = vmatmul.mubr.bf16.vlgmr.msra.gmra.mrb[16].mxu1 %v2170_v48 }
 0x2ed   :  { %3236 = vmatmul.mubr.bf16.vlgmr.msra.gmra.mrb[20].mxu0 %v2172_v50  ;;  %3869 = vmatpush3.bf16.msra.mxu1 %v4152_v47 }
 0x2ee   :  { %3870 = vmatprep.subr.bf16.mxu1 %v4153_v0 }
 0x2f1   :  { %3871 = vmatpush3.bf16.msra.mxu1 %v4154_v52 }
 0x2f2   :  { %3872 = vmatprep.subr.bf16.mxu1 %v4155_v19 }
 0x2f5   :  { %3873 = vmatpush3.bf16.msra.mxu1 %v4156_v51 }
 0x2f6   :  { %3874 = vmatprep.subr.bf16.mxu1 %v4157_v53 }
 0x2f9   :  { %3875 = vmatpush3.bf16.msra.mxu1 %v4158_v54 }
 0x2fa   :  { %3876 = vmatprep.subr.bf16.mxu1 %v4159_v55 }
 0x2fd   :  { %3877 = vmatpush3.bf16.msra.mxu1 %v4160_v56 }
 0x2fe   :  { %3878 = vmatprep.subr.bf16.mxu1 %v4161_v1 }
 0x301   :  { %3879 = vmatpush3.bf16.msra.mxu1 %v4162_v3 }
 0x302   :  { %3880 = vmatprep.subr.bf16.mxu1 %v4163_v7 }
 0x303   :  { %v2433_v57 = vpop.f32.mrb[12].mxu0 }
 0x304   :  { %v2435_v58 = vpop.f32.mrb[13].mxu0 }
 0x305   :  { %v2437_v59 = vpop.f32.mrb[14].mxu0  ;;  %3881 = vmatpush3.bf16.msra.mxu1 %v4164_v10 }
 0x306   :  { %v2438_v60 = vpop.f32.mrb[15].mxu0  ;;  %3882 = vmatprep.subr.bf16.mxu1 %v4165_v12 }
 0x309   :  { %3883 = vmatpush3.bf16.msra.mxu1 %v4166_v13 }
 0x33f   :  { %v3114_v30 = vpop.f32.mrb[12].mxu1 }
 0x340   :  { %v3115_v61 = vadd.f32 %v3114_v30, %v2433_v57  ;;  %v3116_v62 = vpop.f32.mrb[13].mxu1 }
 0x341   :  { %v3117_v2 = vadd.f32 %v3116_v62, %v2435_v58  ;;  %v3118_v21 = vpop.f32.mrb[14].mxu1 }
 0x342   :  { %v3119_v4 = vpop.f32.mrb[15].mxu1 }
 0x343   :  { %v3155_v5 = vpop.f32.mrb[16].mxu0 }
 0x344   :  { %v3156_v28 = vadd.f32 %v3155_v5, %v3115_v61  ;;  %v3157_v6 = vpop.f32.mrb[17].mxu0 }
 0x345   :  { %v3158_v8 = vadd.f32 %v3157_v6, %v3117_v2  ;;  %v3159_v9 = vpop.f32.mrb[18].mxu0 }
 0x346   :  { %v3160_v11 = vpop.f32.mrb[19].mxu0 }
 0x3bf   :  { %v3196_v15 = vpop.f32.mrb[16].mxu1 }
 0x3c0   :  { %v3197_v16 = vadd.f32 %v3196_v15, %v3156_v28  ;;  %v3237_v22 = vpop.f32.mrb[20].mxu0  ;;  %v3198_v24 = vpop.f32.mrb[17].mxu1 }
 0x3c1   :  { %v3199_v25 = vadd.f32 %v3198_v24, %v3158_v8  ;;  %v3239_v26 = vpop.f32.mrb[21].mxu0  ;;  %v3200_v29 = vpop.f32.mrb[18].mxu1 }
 0x3c2   :  { %v3238_v31 = vadd.f32 %v3237_v22, %v3197_v16  ;;  %v3241_v32 = vpop.f32.mrb[22].mxu0  ;;  %v3201_v42 = vpop.f32.mrb[19].mxu1 }
 0x3c3   :  { %v3240_v33 = vadd.f32 %v3239_v26, %v3199_v25  ;;  %v3242_v34 = vpop.f32.mrb[23].mxu0 }
 0x3c4   :  { %v3257_v35 = vadd.f32 %v3250_v23, %v3238_v31 }
 0x3c5   :  { %v3258_v36 = vadd.f32 %v3254_v27, %v3240_v33 }
 0x3c6   :  { %v3259_v37 = vmax.f32 %v3257_v35, 0.0 }
 0x3c7   :  { %v3260_v38 = vmax.f32 %v3258_v36, 0.0 }
 0x3c8   :  { %v3261_v40 = vpack.c.bf16 %v3259_v37, %v3259_v37 }
 0x3c9   :  { %v3262_v39 = vpack.c.bf16 %v3260_v38, %v3260_v38 }
 0x3cb   :  { %3428 = vmatprep.mubr.bf16.mxu1 %v3262_v39 }
 0x3cc   :  { %3429 = vmatmul.mubr.bf16.vlgmr.msra.gmra.mrb[20].mxu1 %v3261_v40 }
 0x49f   :  { %v3884_v18 = vpop.f32.mrb[20].mxu1 }
 0x4a0   :  { %v3885_v17 = vpop.f32.mrb[21].mxu1 }
 0x4a1   :  { %v3886_v43 = vadd.f32 %v3885_v17, %v3884_v18  ;;  %v3887_v45 = vpop.f32.mrb[22].mxu1 }
 0x4a2   :  { %v3888_v20 = vpop.f32.mrb[23].mxu1 }
 0x4a3   :  { %v3431_v46 = vadd.f32 %v3886_v43, %v3851_v41 }
 0x4a5   :  { %3436 = vst [vmem:[%s4538_s8] sm:$0xff] %v3431_v46 }
 0x4a6   :  { %3441 = vsyncpa [#allocation3], 1 }
 0x4a7   :  { %3442 = vsyncpa [#allocation5], 1 }
 0x4a8   :  { %3443 = vsyncpa [#allocation8], 1 }
 0x4a9   :  { %3444 = vsyncpa [#allocation11], 1 }

</bundles_post_ra>
